<compile_context>
chip_gen: v7x
topology: tpu7x:2x2x1
jax: 0.10.0
libtpu: 0.0.40
codegen_flags: <defaults>
</compile_context>

<pallas_src>
import functools

import jax
import jax.numpy as jnp
from jax.experimental import pallas as pl
from jax.experimental.pallas import tpu as pltpu

DROPOUT = 0.2


def _round_up(x, m):
    return ((x + m - 1) // m) * m


def _ffn_kernel(*refs, apply_dropout):
    # Inputs (per grid step i over row tiles):
    #   x_ref: (tm, D) bf16      w1_ref: (D, H) bf16   b1_ref: (1, H) f32
    #   w2_ref: (H, D) bf16      b2_ref: (1, D) f32
    #   mask_ref (training only): (tm, D) bf16, values in {0, 1/(1-p)}
    #   o_ref: (tm, D) f32
    if apply_dropout:
        x_ref, w1_ref, b1_ref, w2_ref, b2_ref, mask_ref, o_ref = refs
    else:
        x_ref, w1_ref, b1_ref, w2_ref, b2_ref, o_ref = refs
        mask_ref = None

    # Linear 1 (bf16 MXU matmul, f32 accumulation) + bias + ReLU.
    h = jnp.dot(x_ref[...], w1_ref[...], preferred_element_type=jnp.float32)
    h = jnp.maximum(h + b1_ref[...], 0.0)

    # Linear 2 (bf16 MXU matmul, f32 accumulation) + bias.
    y = jnp.dot(h.astype(jnp.bfloat16), w2_ref[...],
                preferred_element_type=jnp.float32)
    y = y + b2_ref[...]

    if apply_dropout:
        # Pre-scaled keep-mask: one VPU multiply, no convert / no extra where.
        y = y * mask_ref[...]

    o_ref[...] = y.astype(o_ref.dtype)


def feed_forward(x, w1, b1, w2, b2, *, rng_key=None, dropout_rate=DROPOUT,
                 training=True, tm=256):
    """x: (..., D) -> (..., D).  w1: (D, 4D), b1: (4D,), w2: (4D, D), b2: (D,)."""
    orig_shape = x.shape
    D = orig_shape[-1]
    H = w1.shape[1]
    x2 = x.reshape(-1, D)
    M = x2.shape[0]

    # Large row tile for MXU utilization; clamp to (sublane-rounded) row count
    # so tiny inputs don't over-pad, and pad rows so arbitrary M is accepted.
    tm_eff = max(8, min(int(tm), _round_up(M, 8)))
    M_pad = _round_up(M, tm_eff)

    x_bf16 = x2.astype(jnp.bfloat16)
    if M_pad != M:
        x_bf16 = jnp.pad(x_bf16, ((0, M_pad - M), (0, 0)))

    w1_bf16 = w1.astype(jnp.bfloat16)
    w2_bf16 = w2.astype(jnp.bfloat16)
    b1_2d = b1.reshape(1, H).astype(jnp.float32)
    b2_2d = b2.reshape(1, D).astype(jnp.float32)

    apply_dropout = bool(training) and float(dropout_rate) > 0.0

    inputs = [x_bf16, w1_bf16, b1_2d, w2_bf16, b2_2d]
    # NOTE: weight/bias specs have constant index_maps, so their tiles are
    # revisited (DMA'd once) across the row grid.  For very large weights they
    # could additionally be single-buffered (pipeline_mode=pl.Buffered(1)) to
    # halve resident VMEM; unnecessary at this size.
    in_specs = [
        pl.BlockSpec((tm_eff, D), lambda i: (i, 0)),   # x row tile
        pl.BlockSpec((D, H), lambda i: (0, 0)),        # W1 (resident)
        pl.BlockSpec((1, H), lambda i: (0, 0)),        # b1
        pl.BlockSpec((H, D), lambda i: (0, 0)),        # W2 (resident)
        pl.BlockSpec((1, D), lambda i: (0, 0)),        # b2
    ]

    if apply_dropout:
        if rng_key is None:
            rng_key = jax.random.PRNGKey(0)
        keep = jax.random.bernoulli(rng_key, 1.0 - float(dropout_rate),
                                    (M_pad, D))
        scale = 1.0 / (1.0 - float(dropout_rate))
        mask = (keep.astype(jnp.float32) * scale).astype(jnp.bfloat16)
        inputs.append(mask)
        in_specs.append(pl.BlockSpec((tm_eff, D), lambda i: (i, 0)))

    flops = 4 * M_pad * D * H  # two matmuls, 2*M*D*H flops each
    bytes_accessed = (sum(int(a.size) * a.dtype.itemsize for a in inputs)
                      + M_pad * D * jnp.dtype(x.dtype).itemsize)

    out = pl.pallas_call(
        functools.partial(_ffn_kernel, apply_dropout=apply_dropout),
        out_shape=jax.ShapeDtypeStruct((M_pad, D), x.dtype),
        grid_spec=pltpu.PrefetchScalarGridSpec(
            num_scalar_prefetch=0,
            grid=(M_pad // tm_eff,),
            in_specs=in_specs,
            out_specs=pl.BlockSpec((tm_eff, D), lambda i: (i, 0)),
        ),
        compiler_params=pltpu.CompilerParams(
            dimension_semantics=("parallel",)),
        cost_estimate=pl.CostEstimate(flops=flops, transcendentals=0,
                                      bytes_accessed=bytes_accessed),
    )(*inputs)

    if M_pad != M:
        out = out[:M]
    return out.reshape(orig_shape)


if __name__ == "__main__":
    # Small shapes consistent with the module: batch=2, seq=8, n_embd=384,
    # hidden = 4 * n_embd = 1536.
    B, T, D = 2, 8, 384
    H = 4 * D

    key = jax.random.PRNGKey(0)
    kx, kw1, kb1, kw2, kb2, kdrop = jax.random.split(key, 6)

    # nn.Linear-style init (weights stored transposed: kernel does x @ W).
    bound1 = 1.0 / jnp.sqrt(D)
    bound2 = 1.0 / jnp.sqrt(H)
    w1 = jax.random.uniform(kw1, (D, H), jnp.float32, -bound1, bound1)
    b1 = jax.random.uniform(kb1, (H,), jnp.float32, -bound1, bound1)
    w2 = jax.random.uniform(kw2, (H, D), jnp.float32, -bound2, bound2)
    b2 = jax.random.uniform(kb2, (D,), jnp.float32, -bound2, bound2)

    x = jax.random.normal(kx, (B, T, D), jnp.float32)

    # Training mode (dropout active, deterministic key).
    y_train = jax.block_until_ready(
        feed_forward(x, w1, b1, w2, b2, rng_key=kdrop, training=True))

    # Eval mode (dropout off) vs. a pure-JAX reference using the same bf16
    # matmul precision.
    y_eval = jax.block_until_ready(
        feed_forward(x, w1, b1, w2, b2, training=False))

    xb = x.reshape(-1, D).astype(jnp.bfloat16)
    h_ref = jnp.maximum(
        jnp.dot(xb, w1.astype(jnp.bfloat16),
                preferred_element_type=jnp.float32) + b1, 0.0)
    ref = jnp.dot(h_ref.astype(jnp.bfloat16), w2.astype(jnp.bfloat16),
                  preferred_element_type=jnp.float32) + b2

    assert y_train.shape == x.shape and y_eval.shape == x.shape
    assert jnp.allclose(y_eval.reshape(-1, D), ref, atol=2e-2, rtol=2e-2)
    # Dropout sanity: roughly `dropout` fraction of outputs zeroed.
    zero_frac = float(jnp.mean((y_train == 0.0).astype(jnp.float32)))
    assert 0.1 < zero_frac < 0.3, zero_frac

    print("KERNEL_OK")
</pallas_src>

<mosaic_0001>
module attributes {stable_mosaic.version = 11 : i64} {
  func.func @_ffn_kernel(%arg0: i32, %arg1: memref<16x384xbf16, #tpu.memory_space<vmem>>, %arg2: memref<384x1536xbf16, #tpu.memory_space<vmem>>, %arg3: memref<1x1536xf32, #tpu.memory_space<vmem>>, %arg4: memref<1536x384xbf16, #tpu.memory_space<vmem>>, %arg5: memref<1x384xf32, #tpu.memory_space<vmem>>, %arg6: memref<16x384xbf16, #tpu.memory_space<vmem>>, %arg7: memref<16x384xf32, #tpu.memory_space<vmem>>) attributes {dimension_semantics = [#tpu.dimension_semantics<parallel>], iteration_bounds = array<i64: 1>, scalar_prefetch = 0 : i64, scratch_operands = 0 : i64, tpu.core_type = #tpu.core_type<tc>, window_params = [{transform_indices = @transform_0, window_bounds = array<i64: 16, 384>}, {pipeline_mode = #tpu.pipeline_mode<synchronous>, transform_indices = @transform_1, window_bounds = array<i64: 384, 1536>}, {pipeline_mode = #tpu.pipeline_mode<synchronous>, transform_indices = @transform_2, window_bounds = array<i64: 1, 1536>}, {pipeline_mode = #tpu.pipeline_mode<synchronous>, transform_indices = @transform_3, window_bounds = array<i64: 1536, 384>}, {pipeline_mode = #tpu.pipeline_mode<synchronous>, transform_indices = @transform_4, window_bounds = array<i64: 1, 384>}, {transform_indices = @transform_5, window_bounds = array<i64: 16, 384>}, {transform_indices = @transform_6, window_bounds = array<i64: 16, 384>}]} {
    %c0 = arith.constant 0 : index
    %c0_0 = arith.constant 0 : index
    %0 = vector.load %arg1[%c0, %c0_0] : memref<16x384xbf16, #tpu.memory_space<vmem>>, vector<16x384xbf16>
    %c0_1 = arith.constant 0 : index
    %c0_2 = arith.constant 0 : index
    %1 = vector.load %arg2[%c0_1, %c0_2] : memref<384x1536xbf16, #tpu.memory_space<vmem>>, vector<384x1536xbf16>
    %cst = arith.constant dense<0.000000e+00> : vector<16x1536xf32>
    %2 = tpu.matmul %0, %1, %cst {dimension_numbers = #tpu.dot_dimension_numbers<[1], [0], [0], [1], [0, 0, 1, 1], [], []>} : vector<16x384xbf16>, vector<384x1536xbf16>, vector<16x1536xf32> -> vector<16x1536xf32>
    %c0_3 = arith.constant 0 : index
    %c0_4 = arith.constant 0 : index
    %3 = vector.load %arg3[%c0_3, %c0_4] : memref<1x1536xf32, #tpu.memory_space<vmem>>, vector<1x1536xf32>
    %4 = vector.broadcast %3 : vector<1x1536xf32> to vector<16x1536xf32>
    %5 = arith.addf %2, %4 : vector<16x1536xf32>
    %cst_5 = arith.constant 0.000000e+00 : f32
    %6 = vector.broadcast %cst_5 : f32 to vector<16x1536xf32>
    %7 = arith.maximumf %5, %6 : vector<16x1536xf32>
    %8 = arith.truncf %7 : vector<16x1536xf32> to vector<16x1536xbf16>
    %c0_6 = arith.constant 0 : index
    %c0_7 = arith.constant 0 : index
    %9 = vector.load %arg4[%c0_6, %c0_7] : memref<1536x384xbf16, #tpu.memory_space<vmem>>, vector<1536x384xbf16>
    %cst_8 = arith.constant dense<0.000000e+00> : vector<16x384xf32>
    %10 = tpu.matmul %8, %9, %cst_8 {dimension_numbers = #tpu.dot_dimension_numbers<[1], [0], [0], [1], [0, 0, 1, 1], [], []>} : vector<16x1536xbf16>, vector<1536x384xbf16>, vector<16x384xf32> -> vector<16x384xf32>
    %c0_9 = arith.constant 0 : index
    %c0_10 = arith.constant 0 : index
    %11 = vector.load %arg5[%c0_9, %c0_10] : memref<1x384xf32, #tpu.memory_space<vmem>>, vector<1x384xf32>
    %12 = vector.broadcast %11 : vector<1x384xf32> to vector<16x384xf32>
    %13 = arith.addf %10, %12 : vector<16x384xf32>
    %c0_11 = arith.constant 0 : index
    %c0_12 = arith.constant 0 : index
    %14 = vector.load %arg6[%c0_11, %c0_12] : memref<16x384xbf16, #tpu.memory_space<vmem>>, vector<16x384xbf16>
    %15 = arith.extf %14 : vector<16x384xbf16> to vector<16x384xf32>
    %16 = arith.mulf %13, %15 : vector<16x384xf32>
    %c0_13 = arith.constant 0 : index
    %c0_14 = arith.constant 0 : index
    %17 = vector.load %arg7[%c0_13, %c0_14] : memref<16x384xf32, #tpu.memory_space<vmem>>, vector<16x384xf32>
    tpu.vector_store %arg7[%c0_13, %c0_14], %16 {strides = array<i32>} : memref<16x384xf32, #tpu.memory_space<vmem>>, vector<16x384xf32>,
    return
  }
  func.func @transform_0(%arg0: i32) -> (i32, i32) {
    %c0_i32 = arith.constant 0 : i32
    %c0_i32_0 = arith.constant 0 : i32
    return %arg0, %c0_i32 : i32, i32
  }
  func.func @transform_1(%arg0: i32) -> (i32, i32) {
    %c0_i32 = arith.constant 0 : i32
    %c0_i32_0 = arith.constant 0 : i32
    %c0_i32_1 = arith.constant 0 : i32
    return %c0_i32, %c0_i32_0 : i32, i32
  }
  func.func @transform_2(%arg0: i32) -> (i32, i32) {
    %c0_i32 = arith.constant 0 : i32
    %c0_i32_0 = arith.constant 0 : i32
    %c0_i32_1 = arith.constant 0 : i32
    return %c0_i32, %c0_i32_0 : i32, i32
  }
  func.func @transform_3(%arg0: i32) -> (i32, i32) {
    %c0_i32 = arith.constant 0 : i32
    %c0_i32_0 = arith.constant 0 : i32
    %c0_i32_1 = arith.constant 0 : i32
    return %c0_i32, %c0_i32_0 : i32, i32
  }
  func.func @transform_4(%arg0: i32) -> (i32, i32) {
    %c0_i32 = arith.constant 0 : i32
    %c0_i32_0 = arith.constant 0 : i32
    %c0_i32_1 = arith.constant 0 : i32
    return %c0_i32, %c0_i32_0 : i32, i32
  }
  func.func @transform_5(%arg0: i32) -> (i32, i32) {
    %c0_i32 = arith.constant 0 : i32
    %c0_i32_0 = arith.constant 0 : i32
    return %arg0, %c0_i32 : i32, i32
  }
  func.func @transform_6(%arg0: i32) -> (i32, i32) {
    %c0_i32 = arith.constant 0 : i32
    %c0_i32_0 = arith.constant 0 : i32
    return %arg0, %c0_i32 : i32, i32
  }
}

</mosaic_0001>

<bundles_post_ra>
// kernel: tpu_custom_call.1
= control target key start
LH: loop header
LB: loop body
LE: loop exit
PB: predicated region body
PF: predicated region fallthrough
CT: control target
= control target key end

     0   :  { %11 = vsyncpa [#allocation3], 0  ;;  %s6997_s0 = inlined_call_operand.hbm [shape: bf16[16,384], index: 0, kind: input, shape index: {}]   ;;  %s6998_s1 = inlined_call_operand.hbm [shape: bf16[384,1536], index: 1, kind: input, shape index: {}]   ;;  %s6999_s2 = inlined_call_operand.hbm [shape: f32[1,1536], index: 2, kind: input, shape index: {}]   ;;  %s7000_s3 = inlined_call_operand.hbm [shape: bf16[1536,384], index: 3, kind: input, shape index: {}]   ;;  %s7001_s4 = inlined_call_operand.hbm [shape: f32[1,384], index: 4, kind: input, shape index: {}]   ;;  %s7002_s5 = inlined_call_operand.hbm [shape: bf16[16,384], index: 5, kind: input, shape index: {}]   ;;  %s7003_s6 = inlined_call_operand.hbm [shape: f32[16,384], index: 6, kind: output, shape index: {}]  }
   0x1   :  { %12 = vsyncpa [#allocation6], 0 }
   0x2   :  { %13 = vsyncpa [#allocation9], 0 }
   0x3   :  { %14 = vsyncpa [#allocation12], 0 }
   0x4   :  { %15 = vsyncpa [#allocation4], 0  ;;  %s6735_s21 = smov [#allocation5]   ;;  %s6571_s25 = scalar_lea.hbm %s6998_s1, 36864 }
   0x5   :  { %s33_s22 = sshll.u32 %s6735_s21, 4  ;;  %p6572_p0 = scmp.ne.s32.totalorder %s6998_s1, %s6571_s25  ;;  %s34_s22 = int_to_ptr.vmem [resolvable:$true] %s33_s22 }
   0x6   :  { %p6575_p1 = scmp.lt.u32.totalorder %s6571_s25, %s6998_s1 }
   0x8   :  { %p6577_p2 = pnand %p6575_p1, %p6572_p0 }
   0xa   :  { %6580 = shalt.err (!%p6577_p2)
}
   0xb   :  { %s6581_s30 = scalar_lea.vmem %s34_s22, 36864  ;;  %p6586_p4 = scmp.lt.s32.totalorder %s34_s22, %s34_s22 }
   0xc   :  { %p6582_p3 = scmp.ne.s32.totalorder %s34_s22, %s6581_s30  ;;  %p6587_p5 = scmp.lt.s32.totalorder %s6581_s30, %s6581_s30 }
   0xe   :  { %p6588_p6 = por %p6587_p5, %p6586_p4 }
  0x10   :  { %p6589_p7 = pnand %p6588_p6, %p6582_p3 }
  0x12   :  { %6592 = shalt.err (!%p6589_p7)
}
  0x13   :  { %s6736_s7 = smov 768   ;;  %s6737_s8 = smov 48  }
  0x14   :  { %39 = dma.hbm_to_vmem [thread:$0]  %s6998_s1, 36864, %s34_s22, [#allocation6], %s6736_s7, %s6736_s7, %s6737_s8  }
  0x15   :  { %s6738_s11 = smov [#allocation8]   ;;  %s6739_s13 = smov [#allocation2]  }
  0x16   :  { %s55_s12 = sshll.u32 %s6738_s11, 4  ;;  %s21_s14 = sshll.u32 %s6739_s13, 4  ;;  %s56_s12 = int_to_ptr.vmem [resolvable:$true] %s55_s12  ;;  %s22_s14 = int_to_ptr.vmem [resolvable:$true] %s21_s14 }
  0x17   :  { %s6593_s17 = scalar_lea.hbm %s7000_s3, 36864 }
  0x18   :  { %p6594_p8 = scmp.ne.s32.totalorder %s7000_s3, %s6593_s17  ;;  %p6597_p9 = scmp.lt.u32.totalorder %s6593_s17, %s7000_s3 }
  0x1a   :  { %p6599_p10 = pnand %p6597_p9, %p6594_p8 }
  0x1c   :  { %6602 = shalt.err (!%p6599_p10)
}
  0x1d   :  { %s6603_s1 = scalar_lea.vmem %s56_s12, 36864  ;;  %p6608_p12 = scmp.lt.s32.totalorder %s56_s12, %s56_s12 }
  0x1e   :  { %p6604_p11 = scmp.ne.s32.totalorder %s56_s12, %s6603_s1  ;;  %p6609_p13 = scmp.lt.s32.totalorder %s6603_s1, %s6603_s1 }
  0x20   :  { %p6610_p0 = por %p6609_p13, %p6608_p12 }
  0x22   :  { %p6611_p1 = pnand %p6610_p0, %p6604_p11 }
  0x24   :  { %6614 = shalt.err (!%p6611_p1)
}
  0x25   :  { %s6740_s22 = smov 192   ;;  %s6741_s23 = smov 12  }
  0x26   :  { %61 = dma.hbm_to_vmem [thread:$0]  %s7000_s3, 36864, %s56_s12, [#allocation9], %s6740_s22, %s6740_s22, %s6741_s23  }
  0x27   :  { %s6615_s28 = scalar_lea.hbm %s6997_s0, 384 }
  0x28   :  { %p6616_p2 = scmp.ne.s32.totalorder %s6997_s0, %s6615_s28  ;;  %p6619_p3 = scmp.lt.u32.totalorder %s6615_s28, %s6997_s0 }
  0x2a   :  { %p6621_p4 = pnand %p6619_p3, %p6616_p2 }
  0x2c   :  { %6624 = shalt.err (!%p6621_p4)
}
  0x2d   :  { %s6625_s9 = scalar_lea.vmem %s22_s14, 384  ;;  %p6630_p6 = scmp.lt.s32.totalorder %s22_s14, %s22_s14 }
  0x2e   :  { %p6626_p5 = scmp.ne.s32.totalorder %s22_s14, %s6625_s9  ;;  %p6631_p7 = scmp.lt.s32.totalorder %s6625_s9, %s6625_s9 }
  0x30   :  { %p6632_p8 = por %p6631_p7, %p6630_p6 }
  0x32   :  { %p6633_p9 = pnand %p6632_p8, %p6626_p5 }
  0x34   :  { %6636 = shalt.err (!%p6633_p9)
}
  0x35   :  { %27 = dma.hbm_to_vmem [thread:$0]  %s6997_s0, 384, %s22_s14, [#allocation3], %s6740_s22, %s6740_s22, %s6741_s23  }
  0x36   :  { %s6742_s11 = smov [#allocation7]   ;;  %s6743_s13 = smov [#allocation10]  }
  0x37   :  { %s46_s12 = sshll.u32 %s6742_s11, 4  ;;  %s68_s15 = sshll.u32 %s6743_s13, 4  ;;  %s47_s12 = int_to_ptr.vmem [resolvable:$true] %s46_s12  ;;  %s69_s15 = int_to_ptr.vmem [resolvable:$true] %s68_s15 }
  0x38   :  { %s6637_s18 = scalar_lea.hbm %s6999_s2, 192 }
  0x39   :  { %p6638_p10 = scmp.ne.s32.totalorder %s6999_s2, %s6637_s18  ;;  %p6641_p11 = scmp.lt.u32.totalorder %s6637_s18, %s6999_s2 }
  0x3b   :  { %p6643_p12 = pnand %p6641_p11, %p6638_p10 }
  0x3d   :  { %6646 = shalt.err (!%p6643_p12)
}
  0x3e   :  { %s6647_s0 = scalar_lea.vmem %s47_s12, 192  ;;  %p6652_p0 = scmp.lt.s32.totalorder %s47_s12, %s47_s12 }
  0x3f   :  { %p6648_p13 = scmp.ne.s32.totalorder %s47_s12, %s6647_s0  ;;  %p6653_p1 = scmp.lt.s32.totalorder %s6647_s0, %s6647_s0 }
  0x41   :  { %p6654_p2 = por %p6653_p1, %p6652_p0 }
  0x43   :  { %p6655_p3 = pnand %p6654_p2, %p6648_p13 }
  0x45   :  { %6658 = shalt.err (!%p6655_p3)
}
  0x46   :  { %49 = dma.hbm_to_vmem [thread:$0]  %s6999_s2, 192, %s47_s12, [#allocation6]  }
  0x47   :  { %s6659_s27 = scalar_lea.hbm %s7001_s4, 48 }
  0x48   :  { %p6660_p4 = scmp.ne.s32.totalorder %s7001_s4, %s6659_s27  ;;  %p6663_p5 = scmp.lt.u32.totalorder %s6659_s27, %s7001_s4 }
  0x4a   :  { %p6665_p6 = pnand %p6663_p5, %p6660_p4 }
  0x4c   :  { %6668 = shalt.err (!%p6665_p6)
}
  0x4d   :  { %s6669_s8 = scalar_lea.vmem %s69_s15, 48  ;;  %s6673_s9 = scalar_lea.vmem %s69_s15, 64 }
  0x4e   :  { %p6670_p7 = scmp.ne.s32.totalorder %s69_s15, %s6669_s8  ;;  %p6674_p8 = scmp.lt.s32.totalorder %s69_s15, %s69_s15 }
  0x4f   :  { %p6675_p9 = scmp.lt.s32.totalorder %s6673_s9, %s6669_s8 }
  0x51   :  { %p6676_p10 = por %p6675_p9, %p6674_p8 }
  0x53   :  { %p6677_p11 = pnand %p6676_p10, %p6670_p7 }
  0x55   :  { %6680 = shalt.err (!%p6677_p11)
}
  0x56   :  { %71 = dma.hbm_to_vmem [thread:$0]  %s7001_s4, 48, %s69_s15, [#allocation9]  }
  0x57   :  { %s6744_s10 = smov [#allocation11]   ;;  %s6681_s16 = scalar_lea.hbm %s7002_s5, 384 }
  0x58   :  { %s77_s11 = sshll.u32 %s6744_s10, 4  ;;  %p6682_p12 = scmp.ne.s32.totalorder %s7002_s5, %s6681_s16  ;;  %s78_s11 = int_to_ptr.vmem [resolvable:$true] %s77_s11 }
  0x59   :  { %p6685_p13 = scmp.lt.u32.totalorder %s6681_s16, %s7002_s5 }
  0x5b   :  { %p6687_p0 = pnand %p6685_p13, %p6682_p12 }
  0x5d   :  { %6690 = shalt.err (!%p6687_p0)
}
  0x5e   :  { %s6691_s21 = scalar_lea.vmem %s78_s11, 384  ;;  %p6696_p2 = scmp.lt.s32.totalorder %s78_s11, %s78_s11 }
  0x5f   :  { %p6692_p1 = scmp.ne.s32.totalorder %s78_s11, %s6691_s21  ;;  %p6697_p3 = scmp.lt.s32.totalorder %s6691_s21, %s6691_s21 }
  0x61   :  { %p6698_p4 = por %p6697_p3, %p6696_p2 }
  0x63   :  { %p6699_p5 = pnand %p6698_p4, %p6692_p1 }
  0x65   :  { %6702 = shalt.err (!%p6699_p5)
}
  0x66   :  { %83 = dma.hbm_to_vmem [thread:$0]  %s7002_s5, 384, %s78_s11, [#allocation12], %s6740_s22, %s6740_s22, %s6741_s23  }
  0x67   :  { %6725 = dma.done.wait [#allocation3], 384  }
  0x68   :  { %6726 = vsyncadd [#allocation3], 4294966912 }
  0x69   :  { %6727 = dma.done.wait [#allocation6], 37056  }
  0x6a   :  { %6728 = vsyncadd [#allocation6], 4294930240 }
  0x6b   :  { %6729 = dma.done.wait [#allocation9], 36912  }
  0x6c   :  { %6730 = vsyncadd [#allocation9], 4294930384 }
  0x6d   :  { %6731 = dma.done.wait [#allocation12], 384  }
  0x6e   :  { %6732 = vsyncadd [#allocation12], 4294966912  ;;  %v5747_v0 = vld [vmem:[#allocation5 + $0x4] ss:$48 sps:$4 sm:$0xff]   ;;  %v5749_v1 = vld [vmem:[#allocation5] ss:$48 sps:$4 sm:$0xff]  }
  0x6f   :  { %1915 = vmatprep.subr.bf16.mxu1 %v5747_v0  ;;  %v5750_v2 = vld [vmem:[#allocation5 + $0x64] ss:$48 sps:$4 sm:$0xff]   ;;  %v5752_v3 = vld [vmem:[#allocation5 + $0x60] ss:$48 sps:$4 sm:$0xff]   ;;  %v6865_v18 = vld [vmem:[#allocation2 + $0x4] ss:$12 sps:$4 sm:$0xff]  }
  0x70   :  { %1916 = vmatpush1.bf16.msra.mxu1 %v5749_v1  ;;  %v5753_v4 = vld [vmem:[#allocation5 + $0xc4] ss:$48 sps:$4 sm:$0xff]   ;;  %v5755_v5 = vld [vmem:[#allocation5 + $0xc0] ss:$48 sps:$4 sm:$0xff]   ;;  %1947 = vmatprep.mubr.bf16.mxu1 %v6865_v18  ;;  %v6745_v63 = vmov 0   ;;  %s6746_s5 = smov [#allocation13]  }
  0x71   :  { %1917 = vmatprep.subr.bf16.mxu1 %v5750_v2  ;;  %v5756_v6 = vld [vmem:[#allocation5 + $0x124] ss:$48 sps:$4 sm:$0xff]   ;;  %v5758_v7 = vld [vmem:[#allocation5 + $0x120] ss:$48 sps:$4 sm:$0xff]   ;;  %2119 = vmatprep.mubr.bf16.mxu0 %v6865_v18  ;;  %s4935_s22 = sshll.u32 %s6746_s5, 4  ;;  %s4936_s22 = int_to_ptr.vmem [resolvable:$true] %s4935_s22 }
  0x72   :  { %v5759_v8 = vld [vmem:[#allocation5 + $0x184] ss:$48 sps:$4 sm:$0xff]   ;;  %v5761_v9 = vld [vmem:[#allocation5 + $0x180] ss:$48 sps:$4 sm:$0xff]   ;;  %s6703_s23 = scalar_lea.vmem %s4936_s22, 768  ;;  %p6708_p7 = scmp.lt.s32.totalorder %s4936_s22, %s4936_s22 }
  0x73   :  { %v5762_v10 = vld [vmem:[#allocation5 + $0x1e4] ss:$48 sps:$4 sm:$0xff]   ;;  %v5764_v11 = vld [vmem:[#allocation5 + $0x1e0] ss:$48 sps:$4 sm:$0xff]   ;;  %p6704_p6 = scmp.ne.s32.totalorder %s4936_s22, %s6703_s23  ;;  %p6709_p8 = scmp.lt.s32.totalorder %s6703_s23, %s6703_s23 }
  0x74   :  { %1918 = vmatpush1.bf16.msra.mxu1 %v5752_v3  ;;  %v5765_v12 = vld [vmem:[#allocation5 + $0x244] ss:$48 sps:$4 sm:$0xff]   ;;  %v5767_v14 = vld [vmem:[#allocation5 + $0x240] ss:$48 sps:$4 sm:$0xff]  }
  0x75   :  { %1919 = vmatprep.subr.bf16.mxu1 %v5753_v4  ;;  %v5792_v13 = vld [vmem:[#allocation5 + $0x14] ss:$48 sps:$4 sm:$0xff]   ;;  %v5796_v16 = vld [vmem:[#allocation5 + $0x10] ss:$48 sps:$4 sm:$0xff]   ;;  %p6710_p9 = por %p6709_p8, %p6708_p7 }
  0x76   :  { %v5768_v15 = vld [vmem:[#allocation5 + $0x2a4] ss:$48 sps:$4 sm:$0xff]   ;;  %2087 = vmatprep.subr.bf16.mxu0 %v5792_v13  ;;  %v5770_v19 = vld [vmem:[#allocation5 + $0x2a0] ss:$48 sps:$4 sm:$0xff]  }
  0x77   :  { %v5798_v17 = vld [vmem:[#allocation5 + $0x74] ss:$48 sps:$4 sm:$0xff]   ;;  %2088 = vmatpush1.bf16.msra.mxu0 %v5796_v16  ;;  %v5805_v20 = vld [vmem:[#allocation5 + $0x70] ss:$48 sps:$4 sm:$0xff]   ;;  %p6711_p10 = pnand %p6710_p9, %p6704_p6 }
  0x78   :  { %1920 = vmatpush1.bf16.msra.mxu1 %v5755_v5  ;;  %2089 = vmatprep.subr.bf16.mxu0 %v5798_v17  ;;  %v5807_v21 = vld [vmem:[#allocation5 + $0xd4] ss:$48 sps:$4 sm:$0xff]   ;;  %v5812_v23 = vld [vmem:[#allocation5 + $0xd0] ss:$48 sps:$4 sm:$0xff]  }
  0x79   :  { %1921 = vmatprep.subr.bf16.mxu1 %v5756_v6  ;;  %v5771_v22 = vld [vmem:[#allocation5 + $0x304] ss:$48 sps:$4 sm:$0xff]   ;;  %v5773_v25 = vld [vmem:[#allocation5 + $0x300] ss:$48 sps:$4 sm:$0xff]  }
  0x7a   :  { %v5813_v24 = vld [vmem:[#allocation5 + $0x134] ss:$48 sps:$4 sm:$0xff]   ;;  %v5818_v27 = vld [vmem:[#allocation5 + $0x130] ss:$48 sps:$4 sm:$0xff]  }
  0x7b   :  { %2090 = vmatpush1.bf16.msra.mxu0 %v5805_v20  ;;  %v5774_v26 = vld [vmem:[#allocation5 + $0x364] ss:$48 sps:$4 sm:$0xff]   ;;  %v5776_v29 = vld [vmem:[#allocation5 + $0x360] ss:$48 sps:$4 sm:$0xff]  }
  0x7c   :  { %1922 = vmatpush1.bf16.msra.mxu1 %v5758_v7  ;;  %2091 = vmatprep.subr.bf16.mxu0 %v5807_v21  ;;  %v5819_v28 = vld [vmem:[#allocation5 + $0x194] ss:$48 sps:$4 sm:$0xff]   ;;  %v5824_v31 = vld [vmem:[#allocation5 + $0x190] ss:$48 sps:$4 sm:$0xff]  }
  0x7d   :  { %1923 = vmatprep.subr.bf16.mxu1 %v5759_v8  ;;  %v5777_v30 = vld [vmem:[#allocation5 + $0x3c4] ss:$48 sps:$4 sm:$0xff]   ;;  %v5779_v33 = vld [vmem:[#allocation5 + $0x3c0] ss:$48 sps:$4 sm:$0xff]  }
  0x7e   :  { %v5825_v32 = vld [vmem:[#allocation5 + $0x1f4] ss:$48 sps:$4 sm:$0xff]   ;;  %v5830_v35 = vld [vmem:[#allocation5 + $0x1f0] ss:$48 sps:$4 sm:$0xff]  }
  0x7f   :  { %2092 = vmatpush1.bf16.msra.mxu0 %v5812_v23  ;;  %v5780_v34 = vld [vmem:[#allocation5 + $0x424] ss:$48 sps:$4 sm:$0xff]   ;;  %v5782_v37 = vld [vmem:[#allocation5 + $0x420] ss:$48 sps:$4 sm:$0xff]  }
  0x80   :  { %1924 = vmatpush1.bf16.msra.mxu1 %v5761_v9  ;;  %2093 = vmatprep.subr.bf16.mxu0 %v5813_v24  ;;  %v5831_v36 = vld [vmem:[#allocation5 + $0x254] ss:$48 sps:$4 sm:$0xff]   ;;  %v5836_v39 = vld [vmem:[#allocation5 + $0x250] ss:$48 sps:$4 sm:$0xff]  }
  0x81   :  { %1925 = vmatprep.subr.bf16.mxu1 %v5762_v10  ;;  %v5783_v38 = vld [vmem:[#allocation5 + $0x484] ss:$48 sps:$4 sm:$0xff]   ;;  %v5785_v41 = vld [vmem:[#allocation5 + $0x480] ss:$48 sps:$4 sm:$0xff]  }
  0x82   :  { %v5837_v40 = vld [vmem:[#allocation5 + $0x2b4] ss:$48 sps:$4 sm:$0xff]   ;;  %v5842_v43 = vld [vmem:[#allocation5 + $0x2b0] ss:$48 sps:$4 sm:$0xff]  }
  0x83   :  { %2094 = vmatpush1.bf16.msra.mxu0 %v5818_v27  ;;  %v5786_v42 = vld [vmem:[#allocation5 + $0x4e4] ss:$48 sps:$4 sm:$0xff]   ;;  %v5788_v45 = vld [vmem:[#allocation5 + $0x4e0] ss:$48 sps:$4 sm:$0xff]  }
  0x84   :  { %1926 = vmatpush1.bf16.msra.mxu1 %v5764_v11  ;;  %2095 = vmatprep.subr.bf16.mxu0 %v5819_v28  ;;  %v5843_v44 = vld [vmem:[#allocation5 + $0x314] ss:$48 sps:$4 sm:$0xff]   ;;  %v5848_v47 = vld [vmem:[#allocation5 + $0x310] ss:$48 sps:$4 sm:$0xff]  }
  0x85   :  { %1927 = vmatprep.subr.bf16.mxu1 %v5765_v12  ;;  %v5789_v46 = vld [vmem:[#allocation5 + $0x544] ss:$48 sps:$4 sm:$0xff]   ;;  %v5791_v49 = vld [vmem:[#allocation5 + $0x540] ss:$48 sps:$4 sm:$0xff]  }
  0x86   :  { %v5849_v48 = vld [vmem:[#allocation5 + $0x374] ss:$48 sps:$4 sm:$0xff]   ;;  %v5855_v51 = vld [vmem:[#allocation5 + $0x370] ss:$48 sps:$4 sm:$0xff]  }
  0x87   :  { %2096 = vmatpush1.bf16.msra.mxu0 %v5824_v31  ;;  %v5794_v50 = vld [vmem:[#allocation5 + $0x5a4] ss:$48 sps:$4 sm:$0xff]   ;;  %v5797_v53 = vld [vmem:[#allocation5 + $0x5a0] ss:$48 sps:$4 sm:$0xff]  }
  0x88   :  { %1928 = vmatpush1.bf16.msra.mxu1 %v5767_v14  ;;  %2097 = vmatprep.subr.bf16.mxu0 %v5825_v32  ;;  %v5856_v52 = vld [vmem:[#allocation5 + $0x3d4] ss:$48 sps:$4 sm:$0xff]   ;;  %v5861_v55 = vld [vmem:[#allocation5 + $0x3d0] ss:$48 sps:$4 sm:$0xff]  }
  0x89   :  { %1929 = vmatprep.subr.bf16.mxu1 %v5768_v15  ;;  %v5804_v54 = vld [vmem:[#allocation5 + $0x604] ss:$48 sps:$4 sm:$0xff]   ;;  %v5802_v58 = vld [vmem:[#allocation5 + $0x600] ss:$48 sps:$4 sm:$0xff]  }
  0x8a   :  { %v5862_v56 = vld [vmem:[#allocation5 + $0x434] ss:$48 sps:$4 sm:$0xff]   ;;  %v5867_v60 = vld [vmem:[#allocation5 + $0x430] ss:$48 sps:$4 sm:$0xff]  }
  0x8b   :  { %2098 = vmatpush1.bf16.msra.mxu0 %v5830_v35  ;;  %v6869_v57 = vld [vmem:[#allocation2] ss:$12 sps:$4 sm:$0xff]   ;;  %v5809_v62 = vld [vmem:[#allocation5 + $0x660] ss:$48 sps:$4 sm:$0xff]  }
  0x8c   :  { %1930 = vmatpush1.bf16.msra.mxu1 %v5770_v19  ;;  %2099 = vmatprep.subr.bf16.mxu0 %v5831_v36  ;;  %v5811_v59 = vld [vmem:[#allocation5 + $0x664] ss:$48 sps:$4 sm:$0xff]   ;;  %v5873_v1 = vld [vmem:[#allocation5 + $0x490] ss:$48 sps:$4 sm:$0xff]  }
  0x8d   :  { %1931 = vmatprep.subr.bf16.mxu1 %v5771_v22  ;;  %v5868_v61 = vld [vmem:[#allocation5 + $0x494] ss:$48 sps:$4 sm:$0xff]   ;;  %v5815_v3 = vld [vmem:[#allocation5 + $0x6c0] ss:$48 sps:$4 sm:$0xff]  }
  0x8e   :  { %v5817_v0 = vld [vmem:[#allocation5 + $0x6c4] ss:$48 sps:$4 sm:$0xff]   ;;  %v5879_v5 = vld [vmem:[#allocation5 + $0x4f0] ss:$48 sps:$4 sm:$0xff]  }
  0x8f   :  { %2100 = vmatpush1.bf16.msra.mxu0 %v5836_v39  ;;  %v5874_v2 = vld [vmem:[#allocation5 + $0x4f4] ss:$48 sps:$4 sm:$0xff]   ;;  %v5821_v7 = vld [vmem:[#allocation5 + $0x720] ss:$48 sps:$4 sm:$0xff]  }
  0x90   :  { %1932 = vmatpush1.bf16.msra.mxu1 %v5773_v25  ;;  %2101 = vmatprep.subr.bf16.mxu0 %v5837_v40  ;;  %v5823_v4 = vld [vmem:[#allocation5 + $0x724] ss:$48 sps:$4 sm:$0xff]   ;;  %v5885_v9 = vld [vmem:[#allocation5 + $0x550] ss:$48 sps:$4 sm:$0xff]   ;;  %v5854_v25 = vld [vmem:[#allocation5 + $0xc] ss:$48 sps:$4 sm:$0xff]  }
  0x91   :  { %1933 = vmatprep.subr.bf16.mxu1 %v5774_v26  ;;  %v5880_v6 = vld [vmem:[#allocation5 + $0x554] ss:$48 sps:$4 sm:$0xff]   ;;  %v5827_v11 = vld [vmem:[#allocation5 + $0x780] ss:$48 sps:$4 sm:$0xff]  }
  0x92   :  { %v5829_v8 = vld [vmem:[#allocation5 + $0x784] ss:$48 sps:$4 sm:$0xff]   ;;  %v5891_v13 = vld [vmem:[#allocation5 + $0x5b0] ss:$48 sps:$4 sm:$0xff]  }
  0x93   :  { %2102 = vmatpush1.bf16.msra.mxu0 %v5842_v43  ;;  %v5886_v10 = vld [vmem:[#allocation5 + $0x5b4] ss:$48 sps:$4 sm:$0xff]   ;;  %v5833_v15 = vld [vmem:[#allocation5 + $0x7e0] ss:$48 sps:$4 sm:$0xff]  }
  0x94   :  { %1934 = vmatpush1.bf16.msra.mxu1 %v5776_v29  ;;  %2103 = vmatprep.subr.bf16.mxu0 %v5843_v44  ;;  %v5835_v12 = vld [vmem:[#allocation5 + $0x7e4] ss:$48 sps:$4 sm:$0xff]   ;;  %v5892_v17 = vld [vmem:[#allocation5 + $0x610] ss:$48 sps:$4 sm:$0xff]   ;;  %v5852_v29 = vld [vmem:[#allocation5 + $0x8] ss:$48 sps:$4 sm:$0xff]  }
  0x95   :  { %1935 = vmatprep.subr.bf16.mxu1 %v5777_v30  ;;  %v5894_v14 = vld [vmem:[#allocation5 + $0x614] ss:$48 sps:$4 sm:$0xff]   ;;  %v5839_v20 = vld [vmem:[#allocation5 + $0x840] ss:$48 sps:$4 sm:$0xff]   ;;  %v5860_v30 = vld [vmem:[#allocation5 + $0x6c] ss:$48 sps:$4 sm:$0xff]  }
  0x96   :  { %v5841_v16 = vld [vmem:[#allocation5 + $0x844] ss:$48 sps:$4 sm:$0xff]   ;;  %v5898_v22 = vld [vmem:[#allocation5 + $0x670] ss:$48 sps:$4 sm:$0xff]  }
  0x97   :  { %2104 = vmatpush1.bf16.msra.mxu0 %v5848_v47  ;;  %v5900_v19 = vld [vmem:[#allocation5 + $0x674] ss:$48 sps:$4 sm:$0xff]   ;;  %v5845_v24 = vld [vmem:[#allocation5 + $0x8a0] ss:$48 sps:$4 sm:$0xff]  }
  0x98   :  { %1936 = vmatpush1.bf16.msra.mxu1 %v5779_v33  ;;  %2105 = vmatprep.subr.bf16.mxu0 %v5849_v48  ;;  %v5847_v21 = vld [vmem:[#allocation5 + $0x8a4] ss:$48 sps:$4 sm:$0xff]   ;;  %v5904_v26 = vld [vmem:[#allocation5 + $0x6d0] ss:$48 sps:$4 sm:$0xff]   ;;  %v5858_v33 = vld [vmem:[#allocation5 + $0x68] ss:$48 sps:$4 sm:$0xff]  }
  0x99   :  { %1937 = vmatprep.subr.bf16.mxu1 %v5780_v34  ;;  %v5906_v23 = vld [vmem:[#allocation5 + $0x6d4] ss:$48 sps:$4 sm:$0xff]   ;;  %v6875_v28 = vld [vmem:[#allocation2 + $0x8] ss:$12 sps:$4 sm:$0xff]  }
  0x9a   :  { %v5912_v27 = vld [vmem:[#allocation5 + $0x734] ss:$48 sps:$4 sm:$0xff]   ;;  %v5910_v31 = vld [vmem:[#allocation5 + $0x730] ss:$48 sps:$4 sm:$0xff]   ;;  %v5866_v34 = vld [vmem:[#allocation5 + $0xcc] ss:$48 sps:$4 sm:$0xff]  }
  0x9b   :  { %2106 = vmatpush1.bf16.msra.mxu0 %v5855_v51  ;;  %v5918_v32 = vld [vmem:[#allocation5 + $0x794] ss:$48 sps:$4 sm:$0xff]   ;;  %v5916_v35 = vld [vmem:[#allocation5 + $0x790] ss:$48 sps:$4 sm:$0xff]  }
  0x9c   :  { %1938 = vmatpush1.bf16.msra.mxu1 %v5782_v37  ;;  %2107 = vmatprep.subr.bf16.mxu0 %v5856_v52  ;;  %v5924_v36 = vld [vmem:[#allocation5 + $0x7f4] ss:$48 sps:$4 sm:$0xff]   ;;  %v5864_v37 = vld [vmem:[#allocation5 + $0xc8] ss:$48 sps:$4 sm:$0xff]   ;;  %v5922_v39 = vld [vmem:[#allocation5 + $0x7f0] ss:$48 sps:$4 sm:$0xff]  }
  0x9d   :  { %1939 = vmatprep.subr.bf16.mxu1 %v5783_v38  ;;  %v5872_v38 = vld [vmem:[#allocation5 + $0x12c] ss:$48 sps:$4 sm:$0xff]   ;;  %v5930_v40 = vld [vmem:[#allocation5 + $0x854] ss:$48 sps:$4 sm:$0xff]   ;;  %v5928_v43 = vld [vmem:[#allocation5 + $0x850] ss:$48 sps:$4 sm:$0xff]  }
  0x9e   :  { %v5936_v44 = vld [vmem:[#allocation5 + $0x8b4] ss:$48 sps:$4 sm:$0xff]   ;;  %v5934_v47 = vld [vmem:[#allocation5 + $0x8b0] ss:$48 sps:$4 sm:$0xff]  }
  0x9f   :  { %2108 = vmatpush1.bf16.msra.mxu0 %v5861_v55  ;;  %v5942_v48 = vld [vmem:[#allocation5 + $0x24] ss:$48 sps:$4 sm:$0xff]   ;;  %v5940_v51 = vld [vmem:[#allocation5 + $0x20] ss:$48 sps:$4 sm:$0xff]  }
  0xa0   :  { %1940 = vmatpush1.bf16.msra.mxu1 %v5785_v41  ;;  %2109 = vmatprep.subr.bf16.mxu0 %v5862_v56  ;;  %v5870_v41 = vld [vmem:[#allocation5 + $0x128] ss:$48 sps:$4 sm:$0xff]   ;;  %v5948_v52 = vld [vmem:[#allocation5 + $0x84] ss:$48 sps:$4 sm:$0xff]   ;;  %v5946_v55 = vld [vmem:[#allocation5 + $0x80] ss:$48 sps:$4 sm:$0xff]  }
  0xa1   :  { %1941 = vmatprep.subr.bf16.mxu1 %v5786_v42  ;;  %v5878_v42 = vld [vmem:[#allocation5 + $0x18c] ss:$48 sps:$4 sm:$0xff]   ;;  %v5954_v56 = vld [vmem:[#allocation5 + $0xe4] ss:$48 sps:$4 sm:$0xff]  }
  0xa3   :  { %2110 = vmatpush1.bf16.msra.mxu0 %v5867_v60  ;;  %v5952_v60 = vld [vmem:[#allocation5 + $0xe0] ss:$48 sps:$4 sm:$0xff]  }
  0xa4   :  { %1942 = vmatpush1.bf16.msra.mxu1 %v5788_v45  ;;  %2111 = vmatprep.subr.bf16.mxu0 %v5868_v61  ;;  %v5876_v45 = vld [vmem:[#allocation5 + $0x188] ss:$48 sps:$4 sm:$0xff]   ;;  %v5960_v61 = vld [vmem:[#allocation5 + $0x144] ss:$48 sps:$4 sm:$0xff]  }
  0xa5   :  { %1943 = vmatprep.subr.bf16.mxu1 %v5789_v46  ;;  %v5884_v46 = vld [vmem:[#allocation5 + $0x1ec] ss:$48 sps:$4 sm:$0xff]  }
  0xa7   :  { %2112 = vmatpush1.bf16.msra.mxu0 %v5873_v1  ;;  %v5958_v1 = vld [vmem:[#allocation5 + $0x140] ss:$48 sps:$4 sm:$0xff]  }
  0xa8   :  { %1944 = vmatpush1.bf16.msra.mxu1 %v5791_v49  ;;  %2113 = vmatprep.subr.bf16.mxu0 %v5874_v2  ;;  %v5882_v49 = vld [vmem:[#allocation5 + $0x1e8] ss:$48 sps:$4 sm:$0xff]   ;;  %v5966_v2 = vld [vmem:[#allocation5 + $0x1a4] ss:$48 sps:$4 sm:$0xff]  }
  0xa9   :  { %1945 = vmatprep.subr.bf16.mxu1 %v5794_v50  ;;  %v5890_v50 = vld [vmem:[#allocation5 + $0x24c] ss:$48 sps:$4 sm:$0xff]  }
  0xab   :  { %2114 = vmatpush1.bf16.msra.mxu0 %v5879_v5  ;;  %v5972_v5 = vld [vmem:[#allocation5 + $0x204] ss:$48 sps:$4 sm:$0xff]  }
  0xac   :  { %1946 = vmatpush1.bf16.msra.mxu1 %v5797_v53  ;;  %2115 = vmatprep.subr.bf16.mxu0 %v5880_v6  ;;  %v5888_v53 = vld [vmem:[#allocation5 + $0x248] ss:$48 sps:$4 sm:$0xff]  }
  0xad   :  { %1958 = vmatprep.subr.bf16.mxu1 %v5804_v54  ;;  %v5897_v54 = vld [vmem:[#allocation5 + $0x2ac] ss:$48 sps:$4 sm:$0xff]   ;;  %v5913_v6 = vld [vmem:[#allocation5 + $0x3c8] ss:$48 sps:$4 sm:$0xff]  }
  0xaf   :  { %1948 = vmatmul.mubr.bf16.vlgmr.msra.gmra.mrb[0].mxu1 %v6869_v57  ;;  %2116 = vmatpush1.bf16.msra.mxu0 %v5885_v9  ;;  %v5978_v9 = vld [vmem:[#allocation5 + $0x264] ss:$48 sps:$4 sm:$0xff]  }
  0xb0   :  { %1959 = vmatpush1.bf16.msra.mxu1 %v5802_v58  ;;  %1990 = vmatprep.mubr.bf16.mxu1 %v6745_v63  ;;  %v5895_v58 = vld [vmem:[#allocation5 + $0x2a8] ss:$48 sps:$4 sm:$0xff]  }
  0xb1   :  { %1960 = vmatprep.subr.bf16.mxu1 %v5811_v59  ;;  %2117 = vmatprep.subr.bf16.mxu0 %v5886_v10  ;;  %v5903_v59 = vld [vmem:[#allocation5 + $0x30c] ss:$48 sps:$4 sm:$0xff]   ;;  %v5919_v10 = vld [vmem:[#allocation5 + $0x428] ss:$48 sps:$4 sm:$0xff]  }
  0xb3   :  { %2118 = vmatpush1.bf16.msra.mxu0 %v5891_v13  ;;  %v5984_v13 = vld [vmem:[#allocation5 + $0x2c4] ss:$48 sps:$4 sm:$0xff]  }
  0xb4   :  { %1961 = vmatpush1.bf16.msra.mxu1 %v5809_v62  ;;  %2130 = vmatprep.subr.bf16.mxu0 %v5894_v14  ;;  %v5901_v62 = vld [vmem:[#allocation5 + $0x308] ss:$48 sps:$4 sm:$0xff]  }
  0xb5   :  { %1962 = vmatprep.subr.bf16.mxu1 %v5817_v0  ;;  %v5909_v0 = vld [vmem:[#allocation5 + $0x36c] ss:$48 sps:$4 sm:$0xff]   ;;  %v5925_v14 = vld [vmem:[#allocation5 + $0x488] ss:$48 sps:$4 sm:$0xff]  }
  0xb6   :  { %2120 = vmatmul.mubr.bf16.vlgmr.msra.gmra.mrb[0].mxu0 %v6869_v57 }
  0xb7   :  { %2131 = vmatpush1.bf16.msra.mxu0 %v5892_v17  ;;  %2162 = vmatprep.mubr.bf16.mxu0 %v6745_v63  ;;  %v5990_v17 = vld [vmem:[#allocation5 + $0x324] ss:$48 sps:$4 sm:$0xff]  }
  0xb8   :  { %1963 = vmatpush1.bf16.msra.mxu1 %v5815_v3  ;;  %2132 = vmatprep.subr.bf16.mxu0 %v5900_v19  ;;  %v5907_v3 = vld [vmem:[#allocation5 + $0x368] ss:$48 sps:$4 sm:$0xff]  }
  0xb9   :  { %1964 = vmatprep.subr.bf16.mxu1 %v5823_v4  ;;  %v5964_v4 = vld [vmem:[#allocation5 + $0x1a0] ss:$48 sps:$4 sm:$0xff]   ;;  %v5931_v19 = vld [vmem:[#allocation5 + $0x4e8] ss:$48 sps:$4 sm:$0xff]  }
  0xbb   :  { %2133 = vmatpush1.bf16.msra.mxu0 %v5898_v22  ;;  %v5996_v22 = vld [vmem:[#allocation5 + $0x384] ss:$48 sps:$4 sm:$0xff]  }
  0xbc   :  { %1965 = vmatpush1.bf16.msra.mxu1 %v5821_v7  ;;  %2134 = vmatprep.subr.bf16.mxu0 %v5906_v23  ;;  %v5921_v7 = vld [vmem:[#allocation5 + $0x42c] ss:$48 sps:$4 sm:$0xff]   ;;  %v5937_v23 = vld [vmem:[#allocation5 + $0x548] ss:$48 sps:$4 sm:$0xff]  }
  0xbd   :  { %1966 = vmatprep.subr.bf16.mxu1 %v5829_v8  ;;  %v5970_v8 = vld [vmem:[#allocation5 + $0x200] ss:$48 sps:$4 sm:$0xff]  }
  0xbf   :  { %2135 = vmatpush1.bf16.msra.mxu0 %v5904_v26  ;;  %v6002_v26 = vld [vmem:[#allocation5 + $0x3e4] ss:$48 sps:$4 sm:$0xff]  }
  0xc0   :  { %1967 = vmatpush1.bf16.msra.mxu1 %v5827_v11  ;;  %2136 = vmatprep.subr.bf16.mxu0 %v5912_v27  ;;  %v5927_v11 = vld [vmem:[#allocation5 + $0x48c] ss:$48 sps:$4 sm:$0xff]   ;;  %v5943_v27 = vld [vmem:[#allocation5 + $0x5a8] ss:$48 sps:$4 sm:$0xff]  }
  0xc1   :  { %1968 = vmatprep.subr.bf16.mxu1 %v5835_v12  ;;  %v5976_v12 = vld [vmem:[#allocation5 + $0x260] ss:$48 sps:$4 sm:$0xff]  }
  0xc3   :  { %2137 = vmatpush1.bf16.msra.mxu0 %v5910_v31  ;;  %v6008_v31 = vld [vmem:[#allocation5 + $0x444] ss:$48 sps:$4 sm:$0xff]  }
  0xc4   :  { %1969 = vmatpush1.bf16.msra.mxu1 %v5833_v15  ;;  %2138 = vmatprep.subr.bf16.mxu0 %v5918_v32  ;;  %v5933_v15 = vld [vmem:[#allocation5 + $0x4ec] ss:$48 sps:$4 sm:$0xff]   ;;  %v5949_v32 = vld [vmem:[#allocation5 + $0x608] ss:$48 sps:$4 sm:$0xff]  }
  0xc5   :  { %1970 = vmatprep.subr.bf16.mxu1 %v5841_v16  ;;  %v5982_v16 = vld [vmem:[#allocation5 + $0x2c0] ss:$48 sps:$4 sm:$0xff]  }
  0xc7   :  { %2139 = vmatpush1.bf16.msra.mxu0 %v5916_v35  ;;  %v6014_v35 = vld [vmem:[#allocation5 + $0x4a4] ss:$48 sps:$4 sm:$0xff]  }
  0xc8   :  { %1971 = vmatpush1.bf16.msra.mxu1 %v5839_v20  ;;  %2140 = vmatprep.subr.bf16.mxu0 %v5924_v36  ;;  %v5939_v20 = vld [vmem:[#allocation5 + $0x54c] ss:$48 sps:$4 sm:$0xff]   ;;  %v5955_v36 = vld [vmem:[#allocation5 + $0x668] ss:$48 sps:$4 sm:$0xff]  }
  0xc9   :  { %1972 = vmatprep.subr.bf16.mxu1 %v5847_v21  ;;  %v5988_v21 = vld [vmem:[#allocation5 + $0x320] ss:$48 sps:$4 sm:$0xff]  }
  0xcb   :  { %2141 = vmatpush1.bf16.msra.mxu0 %v5922_v39  ;;  %v6020_v39 = vld [vmem:[#allocation5 + $0x504] ss:$48 sps:$4 sm:$0xff]  }
  0xcc   :  { %1973 = vmatpush1.bf16.msra.mxu1 %v5845_v24  ;;  %2142 = vmatprep.subr.bf16.mxu0 %v5930_v40  ;;  %v5945_v24 = vld [vmem:[#allocation5 + $0x5ac] ss:$48 sps:$4 sm:$0xff]   ;;  %v5961_v40 = vld [vmem:[#allocation5 + $0x6c8] ss:$48 sps:$4 sm:$0xff]  }
  0xcd   :  { %2001 = vmatprep.subr.bf16.mxu1 %v5854_v25  ;;  %v5994_v25 = vld [vmem:[#allocation5 + $0x380] ss:$48 sps:$4 sm:$0xff]  }
  0xcf   :  { %1991 = vmatmul.mubr.bf16.vlgmr.msra.gmra.mrb[0].mxu1 %v6875_v28  ;;  %2143 = vmatpush1.bf16.msra.mxu0 %v5928_v43  ;;  %v6026_v43 = vld [vmem:[#allocation5 + $0x564] ss:$48 sps:$4 sm:$0xff]  }
  0xd0   :  { %2002 = vmatpush1.bf16.msra.mxu1 %v5852_v29  ;;  %2033 = vmatprep.mubr.bf16.mxu1 %v6865_v18  ;;  %v5951_v29 = vld [vmem:[#allocation5 + $0x60c] ss:$48 sps:$4 sm:$0xff]  }
  0xd1   :  { %2003 = vmatprep.subr.bf16.mxu1 %v5860_v30  ;;  %2144 = vmatprep.subr.bf16.mxu0 %v5936_v44  ;;  %v6000_v30 = vld [vmem:[#allocation5 + $0x3e0] ss:$48 sps:$4 sm:$0xff]   ;;  %v5967_v44 = vld [vmem:[#allocation5 + $0x728] ss:$48 sps:$4 sm:$0xff]  }
  0xd3   :  { %2145 = vmatpush1.bf16.msra.mxu0 %v5934_v47  ;;  %v6032_v47 = vld [vmem:[#allocation5 + $0x5c4] ss:$48 sps:$4 sm:$0xff]  }
  0xd4   :  { %2004 = vmatpush1.bf16.msra.mxu1 %v5858_v33  ;;  %2259 = vmatprep.subr.bf16.mxu0 %v5942_v48  ;;  %v5957_v33 = vld [vmem:[#allocation5 + $0x66c] ss:$48 sps:$4 sm:$0xff]   ;;  %v5973_v48 = vld [vmem:[#allocation5 + $0x788] ss:$48 sps:$4 sm:$0xff]  }
  0xd5   :  { %2005 = vmatprep.subr.bf16.mxu1 %v5866_v34  ;;  %v6006_v34 = vld [vmem:[#allocation5 + $0x440] ss:$48 sps:$4 sm:$0xff]  }
  0xd6   :  { %2163 = vmatmul.mubr.bf16.vlgmr.msra.gmra.mrb[0].mxu0 %v6875_v28 }
  0xd7   :  { %2260 = vmatpush1.bf16.msra.mxu0 %v5940_v51  ;;  %2291 = vmatprep.mubr.bf16.mxu0 %v6865_v18  ;;  %v5915_v18 = vld [vmem:[#allocation5 + $0x3cc] ss:$48 sps:$4 sm:$0xff]   ;;  %v6038_v51 = vld [vmem:[#allocation5 + $0x624] ss:$48 sps:$4 sm:$0xff]  }
  0xd8   :  { %2006 = vmatpush1.bf16.msra.mxu1 %v5864_v37  ;;  %2261 = vmatprep.subr.bf16.mxu0 %v5948_v52  ;;  %v5963_v37 = vld [vmem:[#allocation5 + $0x6cc] ss:$48 sps:$4 sm:$0xff]   ;;  %v5979_v52 = vld [vmem:[#allocation5 + $0x7e8] ss:$48 sps:$4 sm:$0xff]  }
  0xd9   :  { %2007 = vmatprep.subr.bf16.mxu1 %v5872_v38  ;;  %v6012_v38 = vld [vmem:[#allocation5 + $0x4a0] ss:$48 sps:$4 sm:$0xff]  }
  0xdb   :  { %2262 = vmatpush1.bf16.msra.mxu0 %v5946_v55  ;;  %v6044_v55 = vld [vmem:[#allocation5 + $0x684] ss:$48 sps:$4 sm:$0xff]  }
  0xdc   :  { %2008 = vmatpush1.bf16.msra.mxu1 %v5870_v41  ;;  %2263 = vmatprep.subr.bf16.mxu0 %v5954_v56  ;;  %v5969_v41 = vld [vmem:[#allocation5 + $0x72c] ss:$48 sps:$4 sm:$0xff]   ;;  %v5985_v56 = vld [vmem:[#allocation5 + $0x848] ss:$48 sps:$4 sm:$0xff]  }
  0xdd   :  { %2009 = vmatprep.subr.bf16.mxu1 %v5878_v42  ;;  %v6018_v42 = vld [vmem:[#allocation5 + $0x500] ss:$48 sps:$4 sm:$0xff]  }
  0xdf   :  { %2264 = vmatpush1.bf16.msra.mxu0 %v5952_v60  ;;  %v6050_v60 = vld [vmem:[#allocation5 + $0x6e4] ss:$48 sps:$4 sm:$0xff]  }
  0xe0   :  { %2010 = vmatpush1.bf16.msra.mxu1 %v5876_v45  ;;  %2265 = vmatprep.subr.bf16.mxu0 %v5960_v61  ;;  %v5975_v45 = vld [vmem:[#allocation5 + $0x78c] ss:$48 sps:$4 sm:$0xff]   ;;  %v5991_v61 = vld [vmem:[#allocation5 + $0x8a8] ss:$48 sps:$4 sm:$0xff]  }
  0xe1   :  { %2011 = vmatprep.subr.bf16.mxu1 %v5884_v46  ;;  %v6024_v46 = vld [vmem:[#allocation5 + $0x560] ss:$48 sps:$4 sm:$0xff]  }
  0xe3   :  { %2266 = vmatpush1.bf16.msra.mxu0 %v5958_v1  ;;  %v6056_v1 = vld [vmem:[#allocation5 + $0x744] ss:$48 sps:$4 sm:$0xff]  }
  0xe4   :  { %2012 = vmatpush1.bf16.msra.mxu1 %v5882_v49  ;;  %2267 = vmatprep.subr.bf16.mxu0 %v5966_v2  ;;  %v5981_v49 = vld [vmem:[#allocation5 + $0x7ec] ss:$48 sps:$4 sm:$0xff]   ;;  %v5997_v2 = vld [vmem:[#allocation5 + $0x18] ss:$48 sps:$4 sm:$0xff]  }
  0xe5   :  { %2013 = vmatprep.subr.bf16.mxu1 %v5890_v50  ;;  %v6030_v50 = vld [vmem:[#allocation5 + $0x5c0] ss:$48 sps:$4 sm:$0xff]  }
  0xe7   :  { %2268 = vmatpush1.bf16.msra.mxu0 %v5964_v4  ;;  %v6003_v4 = vld [vmem:[#allocation5 + $0x78] ss:$48 sps:$4 sm:$0xff]  }
  0xe8   :  { %2014 = vmatpush1.bf16.msra.mxu1 %v5888_v53  ;;  %2269 = vmatprep.subr.bf16.mxu0 %v5972_v5  ;;  %v5987_v53 = vld [vmem:[#allocation5 + $0x84c] ss:$48 sps:$4 sm:$0xff]  }
  0xe9   :  { %2015 = vmatprep.subr.bf16.mxu1 %v5897_v54  ;;  %v6036_v54 = vld [vmem:[#allocation5 + $0x620] ss:$48 sps:$4 sm:$0xff]   ;;  %v6011_v5 = vld [vmem:[#allocation5 + $0xdc] ss:$48 sps:$4 sm:$0xff]  }
  0xeb   :  { %2270 = vmatpush1.bf16.msra.mxu0 %v5970_v8  ;;  %v6009_v8 = vld [vmem:[#allocation5 + $0xd8] ss:$48 sps:$4 sm:$0xff]  }
  0xec   :  { %2016 = vmatpush1.bf16.msra.mxu1 %v5895_v58  ;;  %2271 = vmatprep.subr.bf16.mxu0 %v5978_v9  ;;  %v5993_v58 = vld [vmem:[#allocation5 + $0x8ac] ss:$48 sps:$4 sm:$0xff]   ;;  %v6068_v9 = vld [vmem:[#allocation5 + $0x804] ss:$48 sps:$4 sm:$0xff]  }
  0xed   :  { %2017 = vmatprep.subr.bf16.mxu1 %v5903_v59  ;;  %v6042_v59 = vld [vmem:[#allocation5 + $0x680] ss:$48 sps:$4 sm:$0xff]  }
  0xef   :  { %2272 = vmatpush1.bf16.msra.mxu0 %v5976_v12  ;;  %v6074_v12 = vld [vmem:[#allocation5 + $0x864] ss:$48 sps:$4 sm:$0xff]  }
  0xf0   :  { %2018 = vmatpush1.bf16.msra.mxu1 %v5901_v62  ;;  %2273 = vmatprep.subr.bf16.mxu0 %v5984_v13  ;;  %v5999_v62 = vld [vmem:[#allocation5 + $0x1c] ss:$48 sps:$4 sm:$0xff]   ;;  %v6015_v13 = vld [vmem:[#allocation5 + $0x138] ss:$48 sps:$4 sm:$0xff]  }
  0xf1   :  { %2019 = vmatprep.subr.bf16.mxu1 %v5909_v0  ;;  %v6048_v0 = vld [vmem:[#allocation5 + $0x6e0] ss:$48 sps:$4 sm:$0xff]  }
  0xf3   :  { %2274 = vmatpush1.bf16.msra.mxu0 %v5982_v16  ;;  %v6080_v16 = vld [vmem:[#allocation5 + $0x8c4] ss:$48 sps:$4 sm:$0xff]  }
  0xf4   :  { %2020 = vmatpush1.bf16.msra.mxu1 %v5907_v3  ;;  %2275 = vmatprep.subr.bf16.mxu0 %v5990_v17  ;;  %v6005_v3 = vld [vmem:[#allocation5 + $0x7c] ss:$48 sps:$4 sm:$0xff]   ;;  %v6021_v17 = vld [vmem:[#allocation5 + $0x198] ss:$48 sps:$4 sm:$0xff]  }
  0xf5   :  { %2021 = vmatprep.subr.bf16.mxu1 %v5915_v18  ;;  %v6062_v18 = vld [vmem:[#allocation5 + $0x7a4] ss:$48 sps:$4 sm:$0xff]  }
  0xf7   :  { %2276 = vmatpush1.bf16.msra.mxu0 %v5988_v21  ;;  %v6089_v21 = vld [vmem:[#allocation8 + $0x4] ss:$12 sps:$4 sm:$0xff]  }
  0xf8   :  { %2022 = vmatpush1.bf16.msra.mxu1 %v5913_v6  ;;  %2277 = vmatprep.subr.bf16.mxu0 %v5996_v22  ;;  %v6886_v6 = vld [vmem:[#allocation2 + $0x4] ss:$12 sps:$4 sm:$0xff]  }
  0xf9   :  { %2023 = vmatprep.subr.bf16.mxu1 %v5921_v7  ;;  %v6060_v7 = vld [vmem:[#allocation5 + $0x7a0] ss:$48 sps:$4 sm:$0xff]   ;;  %v6027_v22 = vld [vmem:[#allocation5 + $0x1f8] ss:$48 sps:$4 sm:$0xff]  }
  0xfb   :  { %2278 = vmatpush1.bf16.msra.mxu0 %v5994_v25  ;;  %v6095_v25 = vld [vmem:[#allocation8 + $0x1c] ss:$12 sps:$4 sm:$0xff]  }
  0xfc   :  { %2024 = vmatpush1.bf16.msra.mxu1 %v5919_v10  ;;  %2279 = vmatprep.subr.bf16.mxu0 %v6002_v26  ;;  %v6017_v10 = vld [vmem:[#allocation5 + $0x13c] ss:$48 sps:$4 sm:$0xff]   ;;  %v6033_v26 = vld [vmem:[#allocation5 + $0x258] ss:$48 sps:$4 sm:$0xff]  }
  0xfd   :  { %2025 = vmatprep.subr.bf16.mxu1 %v5927_v11  ;;  %v6066_v11 = vld [vmem:[#allocation5 + $0x800] ss:$48 sps:$4 sm:$0xff]  }
  0xff   :  { %2280 = vmatpush1.bf16.msra.mxu0 %v6000_v30  ;;  %v6101_v30 = vld [vmem:[#allocation8 + $0x34] ss:$12 sps:$4 sm:$0xff]  }
 0x100   :  { %2026 = vmatpush1.bf16.msra.mxu1 %v5925_v14  ;;  %2281 = vmatprep.subr.bf16.mxu0 %v6008_v31  ;;  %v6023_v14 = vld [vmem:[#allocation5 + $0x19c] ss:$48 sps:$4 sm:$0xff]   ;;  %v6039_v31 = vld [vmem:[#allocation5 + $0x2b8] ss:$48 sps:$4 sm:$0xff]  }
 0x101   :  { %2027 = vmatprep.subr.bf16.mxu1 %v5933_v15  ;;  %v6072_v15 = vld [vmem:[#allocation5 + $0x860] ss:$48 sps:$4 sm:$0xff]  }
 0x103   :  { %2282 = vmatpush1.bf16.msra.mxu0 %v6006_v34  ;;  %v6107_v34 = vld [vmem:[#allocation8 + $0x4c] ss:$12 sps:$4 sm:$0xff]  }
 0x104   :  { %2028 = vmatpush1.bf16.msra.mxu1 %v5931_v19  ;;  %2283 = vmatprep.subr.bf16.mxu0 %v6014_v35  ;;  %v6029_v19 = vld [vmem:[#allocation5 + $0x1fc] ss:$48 sps:$4 sm:$0xff]   ;;  %v6045_v35 = vld [vmem:[#allocation5 + $0x318] ss:$48 sps:$4 sm:$0xff]  }
 0x105   :  { %2029 = vmatprep.subr.bf16.mxu1 %v5939_v20  ;;  %v6078_v20 = vld [vmem:[#allocation5 + $0x8c0] ss:$48 sps:$4 sm:$0xff]  }
 0x107   :  { %2284 = vmatpush1.bf16.msra.mxu0 %v6012_v38  ;;  %v6051_v38 = vld [vmem:[#allocation5 + $0x378] ss:$48 sps:$4 sm:$0xff]  }
 0x108   :  { %2030 = vmatpush1.bf16.msra.mxu1 %v5937_v23  ;;  %2285 = vmatprep.subr.bf16.mxu0 %v6020_v39  ;;  %v6035_v23 = vld [vmem:[#allocation5 + $0x25c] ss:$48 sps:$4 sm:$0xff]  }
 0x109   :  { %2031 = vmatprep.subr.bf16.mxu1 %v5945_v24  ;;  %v6087_v24 = vld [vmem:[#allocation8] ss:$12 sps:$4 sm:$0xff]  }
 0x10a   :  { %v6059_v39 = vld [vmem:[#allocation5 + $0x3dc] ss:$48 sps:$4 sm:$0xff]  }
 0x10b   :  { %2286 = vmatpush1.bf16.msra.mxu0 %v6018_v42  ;;  %v6057_v42 = vld [vmem:[#allocation5 + $0x3d8] ss:$48 sps:$4 sm:$0xff]  }
 0x10c   :  { %2032 = vmatpush1.bf16.msra.mxu1 %v5943_v27  ;;  %2287 = vmatprep.subr.bf16.mxu0 %v6026_v43  ;;  %v6041_v27 = vld [vmem:[#allocation5 + $0x2bc] ss:$48 sps:$4 sm:$0xff]  }
 0x10d   :  { %2044 = vmatprep.subr.bf16.mxu1 %v5951_v29  ;;  %v6093_v29 = vld [vmem:[#allocation8 + $0x18] ss:$12 sps:$4 sm:$0xff]   ;;  %v6065_v43 = vld [vmem:[#allocation5 + $0x43c] ss:$48 sps:$4 sm:$0xff]  }
 0x10f   :  { %2034 = vmatmul.mubr.bf16.vlgmr.msra.gmra.mrb[4].mxu1 %v6869_v57  ;;  %2288 = vmatpush1.bf16.msra.mxu0 %v6024_v46  ;;  %v6063_v46 = vld [vmem:[#allocation5 + $0x438] ss:$48 sps:$4 sm:$0xff]  }
 0x110   :  { %2045 = vmatpush1.bf16.msra.mxu1 %v5949_v32  ;;  %2076 = vmatprep.mubr.bf16.mxu1 %v6745_v63  ;;  %v6047_v32 = vld [vmem:[#allocation5 + $0x31c] ss:$48 sps:$4 sm:$0xff]  }
 0x111   :  { %2046 = vmatprep.subr.bf16.mxu1 %v5957_v33  ;;  %2289 = vmatprep.subr.bf16.mxu0 %v6032_v47  ;;  %v6099_v33 = vld [vmem:[#allocation8 + $0x30] ss:$12 sps:$4 sm:$0xff]  }
 0x112   :  { %v6071_v47 = vld [vmem:[#allocation5 + $0x49c] ss:$48 sps:$4 sm:$0xff]  }
 0x113   :  { %2290 = vmatpush1.bf16.msra.mxu0 %v6030_v50  ;;  %v6069_v50 = vld [vmem:[#allocation5 + $0x498] ss:$48 sps:$4 sm:$0xff]  }
 0x114   :  { %2047 = vmatpush1.bf16.msra.mxu1 %v5955_v36  ;;  %2302 = vmatprep.subr.bf16.mxu0 %v6038_v51  ;;  %v6053_v36 = vld [vmem:[#allocation5 + $0x37c] ss:$48 sps:$4 sm:$0xff]  }
 0x115   :  { %2048 = vmatprep.subr.bf16.mxu1 %v5963_v37  ;;  %v6105_v37 = vld [vmem:[#allocation8 + $0x48] ss:$12 sps:$4 sm:$0xff]   ;;  %v6077_v51 = vld [vmem:[#allocation5 + $0x4fc] ss:$48 sps:$4 sm:$0xff]  }
 0x116   :  { %2292 = vmatmul.mubr.bf16.vlgmr.msra.gmra.mrb[4].mxu0 %v6869_v57  ;;  %v6054_v57 = vld [vmem:[#allocation5 + $0x740] ss:$48 sps:$4 sm:$0xff]  }
 0x117   :  { %2303 = vmatpush1.bf16.msra.mxu0 %v6036_v54  ;;  %2334 = vmatprep.mubr.bf16.mxu0 %v6745_v63  ;;  %v6075_v54 = vld [vmem:[#allocation5 + $0x4f8] ss:$48 sps:$4 sm:$0xff]  }
 0x118   :  { %2049 = vmatpush1.bf16.msra.mxu1 %v5961_v40  ;;  %2304 = vmatprep.subr.bf16.mxu0 %v6044_v55  ;;  %v6111_v40 = vld [vmem:[#allocation8 + $0x60] ss:$12 sps:$4 sm:$0xff]  }
 0x119   :  { %2050 = vmatprep.subr.bf16.mxu1 %v5969_v41  ;;  %v6119_v41 = vld [vmem:[#allocation8 + $0x7c] ss:$12 sps:$4 sm:$0xff]   ;;  %v6083_v55 = vld [vmem:[#allocation5 + $0x55c] ss:$48 sps:$4 sm:$0xff]  }
 0x11b   :  { %2305 = vmatpush1.bf16.msra.mxu0 %v6042_v59  ;;  %v6081_v59 = vld [vmem:[#allocation5 + $0x558] ss:$48 sps:$4 sm:$0xff]  }
 0x11c   :  { %2051 = vmatpush1.bf16.msra.mxu1 %v5967_v44  ;;  %2306 = vmatprep.subr.bf16.mxu0 %v6050_v60  ;;  %v6117_v44 = vld [vmem:[#allocation8 + $0x78] ss:$12 sps:$4 sm:$0xff]   ;;  %v6086_v60 = vld [vmem:[#allocation5 + $0x5bc] ss:$48 sps:$4 sm:$0xff]  }
 0x11d   :  { %2052 = vmatprep.subr.bf16.mxu1 %v5975_v45  ;;  %v6125_v45 = vld [vmem:[#allocation8 + $0x94] ss:$12 sps:$4 sm:$0xff]  }
 0x11f   :  { %2307 = vmatpush1.bf16.msra.mxu0 %v6048_v0  ;;  %v6084_v0 = vld [vmem:[#allocation5 + $0x5b8] ss:$48 sps:$4 sm:$0xff]  }
 0x120   :  { %2053 = vmatpush1.bf16.msra.mxu1 %v5973_v48  ;;  %2308 = vmatprep.subr.bf16.mxu0 %v6056_v1  ;;  %v6123_v48 = vld [vmem:[#allocation8 + $0x90] ss:$12 sps:$4 sm:$0xff]  }
 0x121   :  { %2054 = vmatprep.subr.bf16.mxu1 %v5981_v49  ;;  %v6131_v49 = vld [vmem:[#allocation8 + $0xac] ss:$12 sps:$4 sm:$0xff]   ;;  %v6092_v1 = vld [vmem:[#allocation5 + $0x61c] ss:$48 sps:$4 sm:$0xff]  }
 0x123   :  { %2309 = vmatpush1.bf16.msra.mxu0 %v6054_v57  ;;  %v6155_v57 = vld [vmem:[#allocation8 + $0x10c] ss:$12 sps:$4 sm:$0xff]  }
 0x124   :  { %2055 = vmatpush1.bf16.msra.mxu1 %v5979_v52  ;;  %2310 = vmatprep.subr.bf16.mxu0 %v6062_v18  ;;  %v6129_v52 = vld [vmem:[#allocation8 + $0xa8] ss:$12 sps:$4 sm:$0xff]   ;;  %v6098_v18 = vld [vmem:[#allocation5 + $0x67c] ss:$48 sps:$4 sm:$0xff]  }
 0x125   :  { %2056 = vmatprep.subr.bf16.mxu1 %v5987_v53  ;;  %v6137_v53 = vld [vmem:[#allocation8 + $0xc4] ss:$12 sps:$4 sm:$0xff]  }
 0x127   :  { %2311 = vmatpush1.bf16.msra.mxu0 %v6060_v7  ;;  %v6890_v7 = vld [vmem:[#allocation2] ss:$12 sps:$4 sm:$0xff]  }
 0x128   :  { %2057 = vmatpush1.bf16.msra.mxu1 %v5985_v56  ;;  %2312 = vmatprep.subr.bf16.mxu0 %v6068_v9  ;;  %v6135_v56 = vld [vmem:[#allocation8 + $0xc0] ss:$12 sps:$4 sm:$0xff]  }
 0x129   :  { %2058 = vmatprep.subr.bf16.mxu1 %v5993_v58  ;;  %v6143_v58 = vld [vmem:[#allocation8 + $0xdc] ss:$12 sps:$4 sm:$0xff]   ;;  %v6104_v9 = vld [vmem:[#allocation5 + $0x6dc] ss:$48 sps:$4 sm:$0xff]  }
 0x12b   :  { %2313 = vmatpush1.bf16.msra.mxu0 %v6066_v11  ;;  %v6167_v11 = vld [vmem:[#allocation8 + $0x13c] ss:$12 sps:$4 sm:$0xff]  }
 0x12c   :  { %2059 = vmatpush1.bf16.msra.mxu1 %v5991_v61  ;;  %2314 = vmatprep.subr.bf16.mxu0 %v6074_v12  ;;  %v6141_v61 = vld [vmem:[#allocation8 + $0xd8] ss:$12 sps:$4 sm:$0xff]   ;;  %v6102_v12 = vld [vmem:[#allocation5 + $0x6d8] ss:$48 sps:$4 sm:$0xff]  }
 0x12d   :  { %2173 = vmatprep.subr.bf16.mxu1 %v5999_v62  ;;  %v6149_v62 = vld [vmem:[#allocation8 + $0xf4] ss:$12 sps:$4 sm:$0xff]  }
 0x12f   :  { %2077 = vmatmul.mubr.bf16.vlgmr.msra.gmra.mrb[4].mxu1 %v6875_v28  ;;  %2315 = vmatpush1.bf16.msra.mxu0 %v6072_v15  ;;  %v6173_v15 = vld [vmem:[#allocation8 + $0x154] ss:$12 sps:$4 sm:$0xff]  }
 0x130   :  { %2174 = vmatpush1.bf16.msra.mxu1 %v5997_v2  ;;  %2205 = vmatprep.mubr.bf16.mxu1 %v6886_v6  ;;  %v6147_v2 = vld [vmem:[#allocation8 + $0xf0] ss:$12 sps:$4 sm:$0xff]  }
 0x131   :  { %2175 = vmatprep.subr.bf16.mxu1 %v6005_v3  ;;  %2316 = vmatprep.subr.bf16.mxu0 %v6080_v16  ;;  %v6090_v3 = vld [vmem:[#allocation5 + $0x618] ss:$48 sps:$4 sm:$0xff]  }
 0x132   :  { %v6108_v16 = vld [vmem:[#allocation5 + $0x738] ss:$48 sps:$4 sm:$0xff]  }
 0x133   :  { %2317 = vmatpush1.bf16.msra.mxu0 %v6078_v20  ;;  %v6179_v20 = vld [vmem:[#allocation8 + $0x16c] ss:$12 sps:$4 sm:$0xff]  }
 0x134   :  { %2176 = vmatpush1.bf16.msra.mxu1 %v6003_v4  ;;  %4404 = vmatprep.subr.bf16.mxu0 %v6089_v21  ;;  %v6153_v4 = vld [vmem:[#allocation8 + $0x108] ss:$12 sps:$4 sm:$0xff]   ;;  %v6114_v21 = vld [vmem:[#allocation5 + $0x798] ss:$48 sps:$4 sm:$0xff]  }
 0x135   :  { %2177 = vmatprep.subr.bf16.mxu1 %v6011_v5  ;;  %v6161_v5 = vld [vmem:[#allocation8 + $0x124] ss:$12 sps:$4 sm:$0xff]  }
 0x136   :  { %2335 = vmatmul.mubr.bf16.vlgmr.msra.gmra.mrb[4].mxu0 %v6875_v28  ;;  %v6113_v28 = vld [vmem:[#allocation8 + $0x64] ss:$12 sps:$4 sm:$0xff]  }
 0x137   :  { %4405 = vmatpush1.bf16.msra.mxu0 %v6087_v24  ;;  %v6209_v24 = vld [vmem:[#allocation8 + $0x184] ss:$12 sps:$4 sm:$0xff]  }
 0x138   :  { %2178 = vmatpush1.bf16.msra.mxu1 %v6009_v8  ;;  %4406 = vmatprep.subr.bf16.mxu0 %v6095_v25  ;;  %v6096_v8 = vld [vmem:[#allocation5 + $0x678] ss:$48 sps:$4 sm:$0xff]  }
 0x139   :  { %2179 = vmatprep.subr.bf16.mxu1 %v6017_v10  ;;  %v6159_v10 = vld [vmem:[#allocation8 + $0x120] ss:$12 sps:$4 sm:$0xff]  }
 0x13a   :  { %v6120_v25 = vld [vmem:[#allocation5 + $0x7f8] ss:$48 sps:$4 sm:$0xff]  }
 0x13b   :  { %4407 = vmatpush1.bf16.msra.mxu0 %v6093_v29  ;;  %v6134_v29 = vld [vmem:[#allocation5 + $0x8bc] ss:$48 sps:$4 sm:$0xff]  }
 0x13c   :  { %2180 = vmatpush1.bf16.msra.mxu1 %v6015_v13  ;;  %4408 = vmatprep.subr.bf16.mxu0 %v6101_v30  ;;  %v6110_v13 = vld [vmem:[#allocation5 + $0x73c] ss:$48 sps:$4 sm:$0xff]   ;;  %v6132_v30 = vld [vmem:[#allocation5 + $0x8b8] ss:$48 sps:$4 sm:$0xff]  }
 0x13d   :  { %2181 = vmatprep.subr.bf16.mxu1 %v6023_v14  ;;  %v6165_v14 = vld [vmem:[#allocation8 + $0x138] ss:$12 sps:$4 sm:$0xff]  }
 0x13f   :  { %4409 = vmatpush1.bf16.msra.mxu0 %v6099_v33  ;;  %v6146_v33 = vld [vmem:[#allocation5 + $0x8c] ss:$48 sps:$4 sm:$0xff]  }
 0x140   :  { %2182 = vmatpush1.bf16.msra.mxu1 %v6021_v17  ;;  %4410 = vmatprep.subr.bf16.mxu0 %v6107_v34  ;;  %v6116_v17 = vld [vmem:[#allocation5 + $0x79c] ss:$48 sps:$4 sm:$0xff]  }
 0x141   :  { %2183 = vmatprep.subr.bf16.mxu1 %v6029_v19  ;;  %v6171_v19 = vld [vmem:[#allocation8 + $0x150] ss:$12 sps:$4 sm:$0xff]  }
 0x142   :  { %v6894_v34 = vld [vmem:[#allocation2 + $0x8] ss:$12 sps:$4 sm:$0xff]  }
 0x143   :  { %4411 = vmatpush1.bf16.msra.mxu0 %v6105_v37  ;;  %v6150_v37 = vld [vmem:[#allocation5 + $0xe8] ss:$48 sps:$4 sm:$0xff]  }
 0x144   :  { %2184 = vmatpush1.bf16.msra.mxu1 %v6027_v22  ;;  %4412 = vmatprep.subr.bf16.mxu0 %v6113_v28  ;;  %v6122_v22 = vld [vmem:[#allocation5 + $0x7fc] ss:$48 sps:$4 sm:$0xff]   ;;  %v399_v28 = vlaneseq }
 0x145   :  { %2185 = vmatprep.subr.bf16.mxu1 %v6035_v23  ;;  %v6177_v23 = vld [vmem:[#allocation8 + $0x168] ss:$12 sps:$4 sm:$0xff]  }
 0x147   :  { %4413 = vmatpush1.bf16.msra.mxu0 %v6111_v40  ;;  %v6898_v40 = vshrl.u32 %v399_v28, 7  ;;  %v6195_v28 = vld [vmem:[#allocation5 + $0x4a8] ss:$48 sps:$4 sm:$0xff]  }
 0x148   :  { %2186 = vmatpush1.bf16.msra.mxu1 %v6033_v26  ;;  %4414 = vmatprep.subr.bf16.mxu0 %v6119_v41  ;;  %v6128_v26 = vld [vmem:[#allocation5 + $0x85c] ss:$48 sps:$4 sm:$0xff]  }
 0x149   :  { %2187 = vmatprep.subr.bf16.mxu1 %v6041_v27  ;;  %v6126_v27 = vld [vmem:[#allocation5 + $0x858] ss:$48 sps:$4 sm:$0xff]   ;;  %v6164_v41 = vld [vmem:[#allocation5 + $0x1ac] ss:$48 sps:$4 sm:$0xff]  }
 0x14b   :  { %4415 = vmatpush1.bf16.msra.mxu0 %v6117_v44  ;;  %v6903_v44 = vsub.s32 0, %v6898_v40 }
 0x14c   :  { %2188 = vmatpush1.bf16.msra.mxu1 %v6039_v31  ;;  %4416 = vmatprep.subr.bf16.mxu0 %v6125_v45  ;;  %v6140_v31 = vld [vmem:[#allocation5 + $0x2c] ss:$48 sps:$4 sm:$0xff]  }
 0x14d   :  { %2189 = vmatprep.subr.bf16.mxu1 %v6047_v32  ;;  %v6138_v32 = vld [vmem:[#allocation5 + $0x28] ss:$48 sps:$4 sm:$0xff]   ;;  %v6170_v45 = vld [vmem:[#allocation5 + $0x20c] ss:$48 sps:$4 sm:$0xff]  }
 0x14f   :  { %4417 = vmatpush1.bf16.msra.mxu0 %v6123_v48  ;;  %v6176_v48 = vld [vmem:[#allocation5 + $0x26c] ss:$48 sps:$4 sm:$0xff]  }
 0x150   :  { %2190 = vmatpush1.bf16.msra.mxu1 %v6045_v35  ;;  %4418 = vmatprep.subr.bf16.mxu0 %v6131_v49  ;;  %v6144_v35 = vld [vmem:[#allocation5 + $0x88] ss:$48 sps:$4 sm:$0xff]  }
 0x151   :  { %2191 = vmatprep.subr.bf16.mxu1 %v6053_v36  ;;  %v6152_v36 = vld [vmem:[#allocation5 + $0xec] ss:$48 sps:$4 sm:$0xff]  }
 0x153   :  { %4419 = vmatpush1.bf16.msra.mxu0 %v6129_v52 }
 0x154   :  { %2192 = vmatpush1.bf16.msra.mxu1 %v6051_v38  ;;  %4420 = vmatprep.subr.bf16.mxu0 %v6137_v53  ;;  %v6158_v38 = vld [vmem:[#allocation5 + $0x14c] ss:$48 sps:$4 sm:$0xff]   ;;  %v6174_v53 = vld [vmem:[#allocation5 + $0x268] ss:$48 sps:$4 sm:$0xff]  }
 0x155   :  { %2193 = vmatprep.subr.bf16.mxu1 %v6059_v39  ;;  %v6156_v39 = vld [vmem:[#allocation5 + $0x148] ss:$48 sps:$4 sm:$0xff]  }
 0x157   :  { %4421 = vmatpush1.bf16.msra.mxu0 %v6135_v56 }
 0x158   :  { %2194 = vmatpush1.bf16.msra.mxu1 %v6057_v42  ;;  %4422 = vmatprep.subr.bf16.mxu0 %v6143_v58  ;;  %v6162_v42 = vld [vmem:[#allocation5 + $0x1a8] ss:$48 sps:$4 sm:$0xff]  }
 0x159   :  { %2195 = vmatprep.subr.bf16.mxu1 %v6065_v43  ;;  %v6900_v43 = vld [vmem:[#allocation7] sm:$0xff] }
 0x15b   :  { %4423 = vmatpush1.bf16.msra.mxu0 %v6141_v61  ;;  %v6180_v61 = vld [vmem:[#allocation5 + $0x2c8] ss:$48 sps:$4 sm:$0xff]  }
 0x15c   :  { %2196 = vmatpush1.bf16.msra.mxu1 %v6063_v46  ;;  %4424 = vmatprep.subr.bf16.mxu0 %v6149_v62  ;;  %v6168_v46 = vld [vmem:[#allocation5 + $0x208] ss:$48 sps:$4 sm:$0xff]  }
 0x15d   :  { %2197 = vmatprep.subr.bf16.mxu1 %v6071_v47  ;;  %v402_v47 = vrot.slane %v6900_v43, %v6903_v44 }
 0x15f   :  { %4425 = vmatpush1.bf16.msra.mxu0 %v6147_v2  ;;  %v6185_v2 = vld [vmem:[#allocation5 + $0x32c] ss:$48 sps:$4 sm:$0xff]  }
 0x160   :  { %2198 = vmatpush1.bf16.msra.mxu1 %v6069_v50  ;;  %4426 = vmatprep.subr.bf16.mxu0 %v6155_v57 }
 0x161   :  { %2199 = vmatprep.subr.bf16.mxu1 %v6077_v51 }
 0x163   :  { %4427 = vmatpush1.bf16.msra.mxu0 %v6153_v4  ;;  %v6183_v4 = vld [vmem:[#allocation5 + $0x328] ss:$48 sps:$4 sm:$0xff]  }
 0x164   :  { %2200 = vmatpush1.bf16.msra.mxu1 %v6075_v54  ;;  %4428 = vmatprep.subr.bf16.mxu0 %v6161_v5  ;;  %v6182_v54 = vld [vmem:[#allocation5 + $0x2cc] ss:$48 sps:$4 sm:$0xff]  }
 0x165   :  { %2201 = vmatprep.subr.bf16.mxu1 %v6083_v55  ;;  %v6207_v5 = vld [vmem:[#allocation8 + $0x180] ss:$12 sps:$4 sm:$0xff]  }
 0x167   :  { %4429 = vmatpush1.bf16.msra.mxu0 %v6159_v10  ;;  %v6186_v10 = vld [vmem:[#allocation5 + $0x388] ss:$48 sps:$4 sm:$0xff]  }
 0x168   :  { %2202 = vmatpush1.bf16.msra.mxu1 %v6081_v59  ;;  %4430 = vmatprep.subr.bf16.mxu0 %v6167_v11  ;;  %v6213_v11 = vld [vmem:[#allocation8 + $0x198] ss:$12 sps:$4 sm:$0xff]  }
 0x169   :  { %2203 = vmatprep.subr.bf16.mxu1 %v6086_v60 }
 0x16b   :  { %4431 = vmatpush1.bf16.msra.mxu0 %v6165_v14  ;;  %v417_v14 = vsub.s32 4, %v6898_v40 }
 0x16c   :  { %2204 = vmatpush1.bf16.msra.mxu1 %v6084_v0  ;;  %4432 = vmatprep.subr.bf16.mxu0 %v6173_v15  ;;  %v421_v15 = vsub.s32 5, %v6898_v40 }
 0x16d   :  { %2216 = vmatprep.subr.bf16.mxu1 %v6092_v1 }
 0x16f   :  { %2206 = vmatmul.mubr.bf16.vlgmr.msra.gmra.mrb[8].mxu1 %v6890_v7  ;;  %4433 = vmatpush1.bf16.msra.mxu0 %v6171_v19  ;;  %v6194_v19 = vld [vmem:[#allocation5 + $0x44c] ss:$48 sps:$4 sm:$0xff]  }
 0x170   :  { %2217 = vmatpush1.bf16.msra.mxu1 %v6090_v3  ;;  %2248 = vmatprep.mubr.bf16.mxu1 %v6745_v63 }
 0x171   :  { %2218 = vmatprep.subr.bf16.mxu1 %v6098_v18  ;;  %4434 = vmatprep.subr.bf16.mxu0 %v6179_v20  ;;  %v6227_v20 = vld [vmem:[#allocation8 + $0x1cc] ss:$12 sps:$4 sm:$0xff]  }
 0x173   :  { %4435 = vmatpush1.bf16.msra.mxu0 %v6177_v23  ;;  %v6192_v23 = vld [vmem:[#allocation5 + $0x448] ss:$48 sps:$4 sm:$0xff]  }
 0x174   :  { %2219 = vmatpush1.bf16.msra.mxu1 %v6096_v8  ;;  %4447 = vmatprep.subr.bf16.mxu0 %v6209_v24  ;;  %v6188_v8 = vld [vmem:[#allocation5 + $0x38c] ss:$48 sps:$4 sm:$0xff]   ;;  %v6225_v24 = vld [vmem:[#allocation8 + $0x1c8] ss:$12 sps:$4 sm:$0xff]  }
 0x175   :  { %2220 = vmatprep.subr.bf16.mxu1 %v6104_v9  ;;  %v6215_v9 = vld [vmem:[#allocation8 + $0x19c] ss:$12 sps:$4 sm:$0xff]  }
 0x178   :  { %2221 = vmatpush1.bf16.msra.mxu1 %v6102_v12  ;;  %v6191_v12 = vld [vmem:[#allocation5 + $0x3ec] ss:$48 sps:$4 sm:$0xff]  }
 0x179   :  { %2222 = vmatprep.subr.bf16.mxu1 %v6110_v13  ;;  %v6221_v13 = vld [vmem:[#allocation8 + $0x1b4] ss:$12 sps:$4 sm:$0xff]  }
 0x17c   :  { %2223 = vmatpush1.bf16.msra.mxu1 %v6108_v16  ;;  %v6189_v16 = vld [vmem:[#allocation5 + $0x3e8] ss:$48 sps:$4 sm:$0xff]  }
 0x17d   :  { %2224 = vmatprep.subr.bf16.mxu1 %v6116_v17  ;;  %v6219_v17 = vld [vmem:[#allocation8 + $0x1b0] ss:$12 sps:$4 sm:$0xff]  }
 0x180   :  { %2225 = vmatpush1.bf16.msra.mxu1 %v6114_v21  ;;  %v418_v21 = vrot.slane %v6900_v43, %v417_v14  ;;  %v6269_v14 = vld [vmem:[#allocation8 + $0x288] ss:$12 sps:$4 sm:$0xff]  }
 0x181   :  { %2226 = vmatprep.subr.bf16.mxu1 %v6122_v22  ;;  %v422_v22 = vrot.slane %v6900_v43, %v421_v15  ;;  %v6276_v15 = vld [vmem:[#allocation8 + $0x2a4] ss:$12 sps:$4 sm:$0xff]  }
 0x184   :  { %2227 = vmatpush1.bf16.msra.mxu1 %v6120_v25  ;;  %v6197_v25 = vld [vmem:[#allocation5 + $0x4ac] ss:$48 sps:$4 sm:$0xff]  }
 0x185   :  { %2228 = vmatprep.subr.bf16.mxu1 %v6128_v26  ;;  %v6233_v26 = vld [vmem:[#allocation8 + $0x1e4] ss:$12 sps:$4 sm:$0xff]  }
 0x188   :  { %2229 = vmatpush1.bf16.msra.mxu1 %v6126_v27 }
 0x189   :  { %2230 = vmatprep.subr.bf16.mxu1 %v6134_v29 }
 0x18c   :  { %2231 = vmatpush1.bf16.msra.mxu1 %v6132_v30 }
 0x18d   :  { %2345 = vmatprep.subr.bf16.mxu1 %v6140_v31 }
 0x18f   :  { %2249 = vmatmul.mubr.bf16.vlgmr.msra.gmra.mrb[8].mxu1 %v6894_v34 }
 0x190   :  { %2346 = vmatpush1.bf16.msra.mxu1 %v6138_v32  ;;  %2377 = vmatprep.mubr.bf16.mxu1 %v6886_v6  ;;  %v6906_v6 = vsub.s32 1, %v6898_v40 }
 0x191   :  { %2347 = vmatprep.subr.bf16.mxu1 %v6146_v33  ;;  %v6231_v33 = vld [vmem:[#allocation8 + $0x1e0] ss:$12 sps:$4 sm:$0xff]  }
 0x192   :  { %v406_v49 = vrot.slane %v6900_v43, %v6906_v6 }
 0x194   :  { %2348 = vmatpush1.bf16.msra.mxu1 %v6144_v35 }
 0x195   :  { %2349 = vmatprep.subr.bf16.mxu1 %v6152_v36 }
 0x198   :  { %2350 = vmatpush1.bf16.msra.mxu1 %v6150_v37 }
 0x199   :  { %2351 = vmatprep.subr.bf16.mxu1 %v6158_v38 }
 0x19c   :  { %2352 = vmatpush1.bf16.msra.mxu1 %v6156_v39 }
 0x19d   :  { %2353 = vmatprep.subr.bf16.mxu1 %v6164_v41  ;;  %v6239_v41 = vld [vmem:[#allocation8 + $0x1fc] ss:$12 sps:$4 sm:$0xff]  }
 0x1a0   :  { %2354 = vmatpush1.bf16.msra.mxu1 %v6162_v42  ;;  %v6200_v42 = vld [vmem:[#allocation5 + $0x50c] ss:$48 sps:$4 sm:$0xff]  }
 0x1a1   :  { %2355 = vmatprep.subr.bf16.mxu1 %v6170_v45 }
 0x1a2   :  { %v1992_v50 = vpop.f32.mrb[0].mxu1 }
 0x1a3   :  { %v5661_v51 = vadd.f32 %v1992_v50, %v402_v47  ;;  %v1994_v52 = vpop.f32.mrb[1].mxu1  ;;  %v6203_v50 = vld [vmem:[#allocation5 + $0x56c] ss:$48 sps:$4 sm:$0xff]  }
 0x1a4   :  { %v5662_v55 = vadd.f32 %v1994_v52, %v406_v49  ;;  %v1996_v56 = vpop.f32.mrb[2].mxu1  ;;  %2356 = vmatpush1.bf16.msra.mxu1 %v6168_v46  ;;  %v6245_v52 = vld [vmem:[#allocation8 + $0x214] ss:$12 sps:$4 sm:$0xff]  }
 0x1a5   :  { %v5663_v58 = vadd.f32 %v1996_v56, %v402_v47  ;;  %v1998_v59 = vpop.f32.mrb[3].mxu1  ;;  %2357 = vmatprep.subr.bf16.mxu1 %v6176_v48  ;;  %v2431_v62 = vmax.f32 %v5661_v51, 0.0  ;;  %v6198_v47 = vld [vmem:[#allocation5 + $0x508] ss:$48 sps:$4 sm:$0xff]  }
 0x1a6   :  { %v5664_v60 = vadd.f32 %v1998_v59, %v406_v49  ;;  %v2432_v0 = vmax.f32 %v5662_v55, 0.0  ;;  %v6237_v49 = vld [vmem:[#allocation8 + $0x1f8] ss:$12 sps:$4 sm:$0xff]   ;;  %v6206_v55 = vld [vmem:[#allocation5 + $0x5cc] ss:$48 sps:$4 sm:$0xff]  }
 0x1a7   :  { %v2443_v1 = vmax.f32 %v5663_v58, 0.0  ;;  %v6251_v56 = vld [vmem:[#allocation8 + $0x22c] ss:$12 sps:$4 sm:$0xff]   ;;  %v6249_v59 = vld [vmem:[#allocation8 + $0x228] ss:$12 sps:$4 sm:$0xff]  }
 0x1a8   :  { %v2444_v3 = vmax.f32 %v5664_v60, 0.0  ;;  %2358 = vmatpush1.bf16.msra.mxu1 %v6174_v53  ;;  %v6201_v53 = vld [vmem:[#allocation5 + $0x568] ss:$48 sps:$4 sm:$0xff]   ;;  %v6212_v60 = vld [vmem:[#allocation5 + $0x62c] ss:$48 sps:$4 sm:$0xff]  }
 0x1a9   :  { %v6912_v57 = vpack.c.bf16 %v2443_v1, %v2431_v62  ;;  %2359 = vmatprep.subr.bf16.mxu1 %v6182_v54  ;;  %v2164_v27 = vpop.f32.mrb[0].mxu0  ;;  %v6243_v54 = vld [vmem:[#allocation8 + $0x210] ss:$12 sps:$4 sm:$0xff]   ;;  %v6255_v62 = vld [vmem:[#allocation8 + $0x240] ss:$12 sps:$4 sm:$0xff]  }
 0x1aa   :  { %v6914_v18 = vpack.c.bf16 %v2444_v3, %v2432_v0  ;;  %v5669_v29 = vadd.f32 %v2164_v27, %v418_v21  ;;  %v2166_v30 = vpop.f32.mrb[1].mxu0  ;;  %v6204_v58 = vld [vmem:[#allocation5 + $0x5c8] ss:$48 sps:$4 sm:$0xff]   ;;  %v6259_v3 = vld [vmem:[#allocation8 + $0x258] ss:$12 sps:$4 sm:$0xff]  }
 0x1ab   :  { %v5670_v31 = vadd.f32 %v2166_v30, %v422_v22  ;;  %v2168_v32 = vpop.f32.mrb[2].mxu0  ;;  %v6210_v0 = vld [vmem:[#allocation5 + $0x628] ss:$48 sps:$4 sm:$0xff]   ;;  %v6254_v27 = vld [vmem:[#allocation5 + $0x8cc] ss:$48 sps:$4 sm:$0xff]  }
 0x1ac   :  { %2360 = vmatpush1.bf16.msra.mxu1 %v6180_v61  ;;  %4436 = vmatprep.mubr.bf16.mxu0 %v6914_v18  ;;  %v2435_v35 = vmax.f32 %v5669_v29, 0.0  ;;  %v5671_v36 = vadd.f32 %v2168_v32, %v418_v21  ;;  %v2170_v37 = vpop.f32.mrb[3].mxu0  ;;  %v6257_v61 = vld [vmem:[#allocation8 + $0x244] ss:$12 sps:$4 sm:$0xff]   ;;  %v6261_v1 = vld [vmem:[#allocation8 + $0x25c] ss:$12 sps:$4 sm:$0xff]  }
 0x1ad   :  { %4437 = vmatmul.mubr.bf16.vlgmr.msra.gmra.mrb[8].mxu0 %v6912_v57  ;;  %2361 = vmatprep.subr.bf16.mxu1 %v6185_v2  ;;  %v2436_v38 = vmax.f32 %v5670_v31, 0.0  ;;  %v5672_v39 = vadd.f32 %v2170_v37, %v422_v22  ;;  %v6218_v2 = vld [vmem:[#allocation5 + $0x68c] ss:$48 sps:$4 sm:$0xff]   ;;  %v6279_v21 = vld [vmem:[#allocation8 + $0x2b8] ss:$12 sps:$4 sm:$0xff]  }
 0x1ae   :  { %4448 = vmatpush1.bf16.msra.mxu0 %v6207_v5  ;;  %v2447_v45 = vmax.f32 %v5671_v36, 0.0  ;;  %v6224_v5 = vld [vmem:[#allocation5 + $0x6ec] ss:$48 sps:$4 sm:$0xff]   ;;  %v6289_v29 = vld [vmem:[#allocation8 + $0x2e8] ss:$12 sps:$4 sm:$0xff]  }
 0x1af   :  { %4449 = vmatprep.subr.bf16.mxu0 %v6215_v9  ;;  %v2448_v46 = vmax.f32 %v5672_v39, 0.0  ;;  %v6222_v9 = vld [vmem:[#allocation5 + $0x6e8] ss:$48 sps:$4 sm:$0xff]   ;;  %v6248_v22 = vld [vmem:[#allocation5 + $0x86c] ss:$48 sps:$4 sm:$0xff]  }
 0x1b0   :  { %2362 = vmatpush1.bf16.msra.mxu1 %v6183_v4  ;;  %v6922_v48 = vpack.c.bf16 %v2447_v45, %v2435_v35  ;;  %v6216_v4 = vld [vmem:[#allocation5 + $0x688] ss:$48 sps:$4 sm:$0xff]   ;;  %v6296_v31 = vld [vmem:[#allocation8 + $0x304] ss:$12 sps:$4 sm:$0xff]   ;;  %v6258_v32 = vld [vmem:[#allocation8 + $0xc8] ss:$12 sps:$4 sm:$0xff]  }
 0x1b1   :  { %2363 = vmatprep.subr.bf16.mxu1 %v6188_v8  ;;  %v6924_v51 = vpack.c.bf16 %v2448_v46, %v2436_v38  ;;  %v6266_v8 = vld [vmem:[#allocation8 + $0x274] ss:$12 sps:$4 sm:$0xff]   ;;  %v6252_v30 = vld [vmem:[#allocation5 + $0x8c8] ss:$48 sps:$4 sm:$0xff]   ;;  %v6268_v37 = vld [vmem:[#allocation8 + $0xf8] ss:$12 sps:$4 sm:$0xff]  }
 0x1b2   :  { %4450 = vmatpush1.bf16.msra.mxu0 %v6213_v11  ;;  %v6230_v11 = vld [vmem:[#allocation5 + $0x74c] ss:$48 sps:$4 sm:$0xff]   ;;  %v6282_v45 = vld [vmem:[#allocation8 + $0x68] ss:$12 sps:$4 sm:$0xff]  }
 0x1b3   :  { %4451 = vmatprep.subr.bf16.mxu0 %v6221_v13  ;;  %v6228_v13 = vld [vmem:[#allocation5 + $0x748] ss:$48 sps:$4 sm:$0xff]  }
 0x1b4   :  { %2364 = vmatpush1.bf16.msra.mxu1 %v6186_v10  ;;  %v6264_v10 = vld [vmem:[#allocation8 + $0x270] ss:$12 sps:$4 sm:$0xff]   ;;  %v6263_v35 = vld [vmem:[#allocation8 + $0xe0] ss:$12 sps:$4 sm:$0xff]  }
 0x1b5   :  { %2365 = vmatprep.subr.bf16.mxu1 %v6191_v12  ;;  %v6271_v12 = vld [vmem:[#allocation8 + $0x28c] ss:$12 sps:$4 sm:$0xff]   ;;  %v6273_v38 = vld [vmem:[#allocation8 + $0x110] ss:$12 sps:$4 sm:$0xff]  }
 0x1b6   :  { %4452 = vmatpush1.bf16.msra.mxu0 %v6219_v17  ;;  %v6242_v17 = vld [vmem:[#allocation5 + $0x80c] ss:$48 sps:$4 sm:$0xff]  }
 0x1b7   :  { %4453 = vmatprep.subr.bf16.mxu0 %v6227_v20  ;;  %v6240_v20 = vld [vmem:[#allocation5 + $0x808] ss:$48 sps:$4 sm:$0xff]  }
 0x1b8   :  { %2366 = vmatpush1.bf16.msra.mxu1 %v6189_v16  ;;  %v6234_v16 = vld [vmem:[#allocation5 + $0x7a8] ss:$48 sps:$4 sm:$0xff]  }
 0x1b9   :  { %2367 = vmatprep.subr.bf16.mxu1 %v6194_v19  ;;  %v6281_v19 = vld [vmem:[#allocation8 + $0x2bc] ss:$12 sps:$4 sm:$0xff]   ;;  %v6267_v36 = vld [vmem:[#allocation8 + $0x20] ss:$12 sps:$4 sm:$0xff]  }
 0x1ba   :  { %4454 = vmatpush1.bf16.msra.mxu0 %v6225_v24  ;;  %v6284_v24 = vld [vmem:[#allocation8 + $0x2d0] ss:$12 sps:$4 sm:$0xff]  }
 0x1bb   :  { %4455 = vmatprep.subr.bf16.mxu0 %v6233_v26  ;;  %v6291_v26 = vld [vmem:[#allocation8 + $0x2ec] ss:$12 sps:$4 sm:$0xff]   ;;  %v6277_v39 = vld [vmem:[#allocation8 + $0x50] ss:$12 sps:$4 sm:$0xff]  }
 0x1bc   :  { %2368 = vmatpush1.bf16.msra.mxu1 %v6192_v23  ;;  %v6286_v23 = vld [vmem:[#allocation8 + $0x2d4] ss:$12 sps:$4 sm:$0xff]  }
 0x1bd   :  { %2369 = vmatprep.subr.bf16.mxu1 %v6197_v25  ;;  %v6246_v25 = vld [vmem:[#allocation5 + $0x868] ss:$48 sps:$4 sm:$0xff]  }
 0x1be   :  { %4456 = vmatpush1.bf16.msra.mxu0 %v6231_v33  ;;  %v6262_v33 = vld [vmem:[#allocation8 + $0x8] ss:$12 sps:$4 sm:$0xff]  }
 0x1bf   :  { %4457 = vmatprep.subr.bf16.mxu0 %v6239_v41  ;;  %v6278_v41 = vld [vmem:[#allocation8 + $0x128] ss:$12 sps:$4 sm:$0xff]  }
 0x1c0   :  { %2370 = vmatpush1.bf16.msra.mxu1 %v6195_v28  ;;  %v6272_v28 = vld [vmem:[#allocation8 + $0x38] ss:$12 sps:$4 sm:$0xff]  }
 0x1c1   :  { %2371 = vmatprep.subr.bf16.mxu1 %v6200_v42  ;;  %v6931_v42 = vsub.s32 2, %v6898_v40 }
 0x1c2   :  { %4458 = vmatpush1.bf16.msra.mxu0 %v6237_v49  ;;  %v6287_v49 = vld [vmem:[#allocation8 + $0x80] ss:$12 sps:$4 sm:$0xff]  }
 0x1c3   :  { %4459 = vmatprep.subr.bf16.mxu0 %v6245_v52  ;;  %v410_v46 = vrot.slane %v6900_v43, %v6931_v42 }
 0x1c4   :  { %2372 = vmatpush1.bf16.msra.mxu1 %v6198_v47 }
 0x1c5   :  { %2373 = vmatprep.subr.bf16.mxu1 %v6203_v50  ;;  %v6288_v50 = vld [vmem:[#allocation8 + $0x158] ss:$12 sps:$4 sm:$0xff]  }
 0x1c6   :  { %4460 = vmatpush1.bf16.msra.mxu0 %v6243_v54 }
 0x1c7   :  { %4461 = vmatprep.subr.bf16.mxu0 %v6251_v56 }
 0x1c8   :  { %2374 = vmatpush1.bf16.msra.mxu1 %v6201_v53 }
 0x1c9   :  { %2375 = vmatprep.subr.bf16.mxu1 %v6206_v55 }
 0x1ca   :  { %4462 = vmatpush1.bf16.msra.mxu0 %v6249_v59 }
 0x1cb   :  { %4463 = vmatprep.subr.bf16.mxu0 %v6257_v61  ;;  %v6293_v61 = vld [vmem:[#allocation8 + $0x170] ss:$12 sps:$4 sm:$0xff]  }
 0x1cc   :  { %2376 = vmatpush1.bf16.msra.mxu1 %v6204_v58  ;;  %v6292_v58 = vld [vmem:[#allocation8 + $0x98] ss:$12 sps:$4 sm:$0xff]  }
 0x1cd   :  { %2388 = vmatprep.subr.bf16.mxu1 %v6212_v60 }
 0x1ce   :  { %4464 = vmatpush1.bf16.msra.mxu0 %v6255_v62 }
 0x1cf   :  { %2378 = vmatmul.mubr.bf16.vlgmr.msra.gmra.mrb[12].mxu1 %v6890_v7  ;;  %4465 = vmatprep.subr.bf16.mxu0 %v6261_v1  ;;  %v6236_v7 = vld [vmem:[#allocation5 + $0x7ac] ss:$48 sps:$4 sm:$0xff]  }
 0x1d0   :  { %2389 = vmatpush1.bf16.msra.mxu1 %v6210_v0  ;;  %2420 = vmatprep.mubr.bf16.mxu1 %v6745_v63  ;;  %v6274_v63 = vld [vmem:[#allocation8 + $0x2a0] ss:$12 sps:$4 sm:$0xff]  }
 0x1d1   :  { %2390 = vmatprep.subr.bf16.mxu1 %v6218_v2 }
 0x1d2   :  { %4466 = vmatpush1.bf16.msra.mxu0 %v6259_v3 }
 0x1d3   :  { %4467 = vmatprep.subr.bf16.mxu0 %v6266_v8 }
 0x1d4   :  { %2391 = vmatpush1.bf16.msra.mxu1 %v6216_v4 }
 0x1d5   :  { %2392 = vmatprep.subr.bf16.mxu1 %v6224_v5  ;;  %v6298_v5 = vld [vmem:[#allocation8 + $0x248] ss:$12 sps:$4 sm:$0xff]  }
 0x1d6   :  { %4468 = vmatpush1.bf16.msra.mxu0 %v6264_v10  ;;  %v6301_v10 = vld [vmem:[#allocation8 + $0x31c] ss:$12 sps:$4 sm:$0xff]  }
 0x1d7   :  { %4469 = vmatprep.subr.bf16.mxu0 %v6271_v12  ;;  %v6303_v12 = vld [vmem:[#allocation8 + $0x260] ss:$12 sps:$4 sm:$0xff]  }
 0x1d8   :  { %2393 = vmatpush1.bf16.msra.mxu1 %v6222_v9  ;;  %v6294_v9 = vld [vmem:[#allocation8 + $0x300] ss:$12 sps:$4 sm:$0xff]  }
 0x1d9   :  { %2394 = vmatprep.subr.bf16.mxu1 %v6230_v11  ;;  %v6302_v11 = vld [vmem:[#allocation8 + $0x188] ss:$12 sps:$4 sm:$0xff]  }
 0x1da   :  { %4470 = vmatpush1.bf16.msra.mxu0 %v6269_v14  ;;  %v6306_v14 = vld [vmem:[#allocation8 + $0x334] ss:$12 sps:$4 sm:$0xff]  }
 0x1db   :  { %4471 = vmatprep.subr.bf16.mxu0 %v6276_v15  ;;  %v6308_v15 = vld [vmem:[#allocation8 + $0x278] ss:$12 sps:$4 sm:$0xff]  }
 0x1dc   :  { %2395 = vmatpush1.bf16.msra.mxu1 %v6228_v13  ;;  %v6299_v13 = vld [vmem:[#allocation8 + $0x318] ss:$12 sps:$4 sm:$0xff]  }
 0x1dd   :  { %2396 = vmatprep.subr.bf16.mxu1 %v6236_v7  ;;  %v6307_v7 = vld [vmem:[#allocation8 + $0x1a0] ss:$12 sps:$4 sm:$0xff]  }
 0x1de   :  { %4472 = vmatpush1.bf16.msra.mxu0 %v6274_v63  ;;  %v6304_v63 = vld [vmem:[#allocation8 + $0x330] ss:$12 sps:$4 sm:$0xff]  }
 0x1df   :  { %4473 = vmatprep.subr.bf16.mxu0 %v6281_v19  ;;  %v6312_v19 = vld [vmem:[#allocation8 + $0x1b8] ss:$12 sps:$4 sm:$0xff]  }
 0x1e0   :  { %2397 = vmatpush1.bf16.msra.mxu1 %v6234_v16  ;;  %v6944_v16 = vld [vmem:[#allocation7 + $0x8] sm:$0xf] }
 0x1e1   :  { %2398 = vmatprep.subr.bf16.mxu1 %v6242_v17  ;;  %v6311_v17 = vld [vmem:[#allocation8 + $0x34c] ss:$12 sps:$4 sm:$0xff]  }
 0x1e2   :  { %4474 = vmatpush1.bf16.msra.mxu0 %v6279_v21  ;;  %v438_v21 = vrot.slane %v6944_v16, %v6906_v6 }
 0x1e3   :  { %4475 = vmatprep.subr.bf16.mxu0 %v6286_v23  ;;  %v6316_v23 = vld [vmem:[#allocation8 + $0x364] ss:$12 sps:$4 sm:$0xff]  }
 0x1e4   :  { %2399 = vmatpush1.bf16.msra.mxu1 %v6240_v20  ;;  %v434_v20 = vrot.slane %v6944_v16, %v6903_v44 }
 0x1e5   :  { %2400 = vmatprep.subr.bf16.mxu1 %v6248_v22  ;;  %v6309_v22 = vld [vmem:[#allocation8 + $0x348] ss:$12 sps:$4 sm:$0xff]  }
 0x1e6   :  { %4476 = vmatpush1.bf16.msra.mxu0 %v6284_v24 }
 0x1e7   :  { %4477 = vmatprep.subr.bf16.mxu0 %v6291_v26 }
 0x1e8   :  { %2401 = vmatpush1.bf16.msra.mxu1 %v6246_v25  ;;  %v6317_v25 = vld [vmem:[#allocation8 + $0x1d0] ss:$12 sps:$4 sm:$0xff]  }
 0x1e9   :  { %2402 = vmatprep.subr.bf16.mxu1 %v6254_v27 }
 0x1ea   :  { %4478 = vmatpush1.bf16.msra.mxu0 %v6289_v29  ;;  %v6318_v29 = vld [vmem:[#allocation8 + $0x2a8] ss:$12 sps:$4 sm:$0xff]  }
 0x1eb   :  { %4490 = vmatprep.subr.bf16.mxu0 %v6296_v31 }
 0x1ec   :  { %2403 = vmatpush1.bf16.msra.mxu1 %v6252_v30 }
 0x1ed   :  { %5529 = vmatprep.subr.bf16.mxu1 %v6258_v32  ;;  %v6314_v32 = vld [vmem:[#allocation8 + $0x360] ss:$12 sps:$4 sm:$0xff]  }
 0x1ef   :  { %2421 = vmatmul.mubr.bf16.vlgmr.msra.gmra.mrb[12].mxu1 %v6894_v34  ;;  %v413_v34 = vsub.s32 3, %v6898_v40 }
 0x1f0   :  { %5530 = vmatpush3.bf16.msra.mxu1 %v6262_v33  ;;  %4694 = vmatprep.mubr.bf16.mxu1 %v6914_v18  ;;  %v6283_v18 = vld [vmem:[#allocation8 + $0x140] ss:$12 sps:$4 sm:$0xff]  }
 0x1f1   :  { %5531 = vmatprep.subr.bf16.mxu1 %v6263_v35  ;;  %v414_v47 = vrot.slane %v6900_v43, %v413_v34  ;;  %v6297_v43 = vld [vmem:[#allocation8 + $0xb0] ss:$12 sps:$4 sm:$0xff]  }
 0x1f4   :  { %5532 = vmatpush3.bf16.msra.mxu1 %v6267_v36 }
 0x1f5   :  { %5533 = vmatprep.subr.bf16.mxu1 %v6268_v37  ;;  %v6321_v37 = vld [vmem:[#allocation8 + $0x37c] ss:$12 sps:$4 sm:$0xff]  }
 0x1f8   :  { %5534 = vmatpush3.bf16.msra.mxu1 %v6272_v28 }
 0x1f9   :  { %5535 = vmatprep.subr.bf16.mxu1 %v6273_v38 }
 0x1fc   :  { %5536 = vmatpush3.bf16.msra.mxu1 %v6277_v39  ;;  %v6322_v39 = vld [vmem:[#allocation8 + $0x1e8] ss:$12 sps:$4 sm:$0xff]  }
 0x1fd   :  { %5537 = vmatprep.subr.bf16.mxu1 %v6278_v41 }
 0x200   :  { %5538 = vmatpush3.bf16.msra.mxu1 %v6282_v45  ;;  %v6323_v45 = vld [vmem:[#allocation8 + $0x2c0] ss:$12 sps:$4 sm:$0xff]  }
 0x201   :  { %5539 = vmatprep.subr.bf16.mxu1 %v6283_v18 }
 0x202   :  { %v2078_v52 = vpop.f32.mrb[4].mxu1 }
 0x203   :  { %v5665_v53 = vadd.f32 %v2078_v52, %v410_v46  ;;  %v2080_v54 = vpop.f32.mrb[5].mxu1  ;;  %v6327_v52 = vld [vmem:[#allocation8 + $0x200] ss:$12 sps:$4 sm:$0xff]  }
 0x204   :  { %v5666_v55 = vadd.f32 %v2080_v54, %v414_v47  ;;  %v2082_v56 = vpop.f32.mrb[6].mxu1  ;;  %5540 = vmatpush3.bf16.msra.mxu1 %v6287_v49  ;;  %v6326_v49 = vld [vmem:[#allocation8 + $0x394] ss:$12 sps:$4 sm:$0xff]   ;;  %v6324_v54 = vld [vmem:[#allocation8 + $0x390] ss:$12 sps:$4 sm:$0xff]  }
 0x205   :  { %v5667_v59 = vadd.f32 %v2082_v56, %v410_v46  ;;  %v2084_v60 = vpop.f32.mrb[7].mxu1  ;;  %5541 = vmatprep.subr.bf16.mxu1 %v6288_v50  ;;  %v2433_v0 = vmax.f32 %v5665_v53, 0.0  ;;  %v6319_v46 = vld [vmem:[#allocation8 + $0x378] ss:$12 sps:$4 sm:$0xff]  }
 0x206   :  { %v5668_v62 = vadd.f32 %v2084_v60, %v414_v47  ;;  %v2434_v2 = vmax.f32 %v5666_v55, 0.0  ;;  %v6328_v53 = vld [vmem:[#allocation8 + $0x2d8] ss:$12 sps:$4 sm:$0xff]  }
 0x207   :  { %v2445_v1 = vmax.f32 %v5667_v59, 0.0  ;;  %v6331_v55 = vld [vmem:[#allocation8 + $0x3ac] ss:$12 sps:$4 sm:$0xff]   ;;  %v6329_v59 = vld [vmem:[#allocation8 + $0x3a8] ss:$12 sps:$4 sm:$0xff]  }
 0x208   :  { %v2446_v3 = vmax.f32 %v5668_v62, 0.0  ;;  %5542 = vmatpush3.bf16.msra.mxu1 %v6292_v58  ;;  %v6332_v56 = vld [vmem:[#allocation8 + $0x218] ss:$12 sps:$4 sm:$0xff]   ;;  %v6333_v58 = vld [vmem:[#allocation8 + $0x2f0] ss:$12 sps:$4 sm:$0xff]  }
 0x209   :  { %v6939_v4 = vpack.c.bf16 %v2445_v1, %v2433_v0  ;;  %5543 = vmatprep.subr.bf16.mxu1 %v6293_v61  ;;  %v2336_v24 = vpop.f32.mrb[4].mxu0  ;;  %v6336_v60 = vld [vmem:[#allocation8 + $0x3c4] ss:$12 sps:$4 sm:$0xff]   ;;  %v6338_v62 = vld [vmem:[#allocation8 + $0x3c8] ss:$12 sps:$4 sm:$0xff]  }
 0x20a   :  { %v2458_v8 = vpack.c.bf16 %v2446_v3, %v2434_v2  ;;  %v5677_v26 = vadd.f32 %v2336_v24, %v434_v20  ;;  %v2338_v27 = vpop.f32.mrb[5].mxu0  ;;  %v6337_v61 = vld [vmem:[#allocation8 + $0x230] ss:$12 sps:$4 sm:$0xff]   ;;  %v6334_v0 = vld [vmem:[#allocation8 + $0x3c0] ss:$12 sps:$4 sm:$0xff]  }
 0x20b   :  { %v5678_v30 = vadd.f32 %v2338_v27, %v438_v21  ;;  %v2340_v31 = vpop.f32.mrb[6].mxu0  ;;  %v6341_v1 = vld [vmem:[#allocation8 + $0x3dc] ss:$12 sps:$4 sm:$0xff]   ;;  %v6343_v3 = vld [vmem:[#allocation8 + $0x3e0] ss:$12 sps:$4 sm:$0xff]  }
 0x20c   :  { %4479 = vmatprep.mubr.bf16.mxu0 %v2458_v8  ;;  %5544 = vmatpush3.bf16.msra.mxu1 %v6297_v43  ;;  %v2439_v33 = vmax.f32 %v5677_v26, 0.0  ;;  %v5679_v35 = vadd.f32 %v2340_v31, %v434_v20  ;;  %v2342_v36 = vpop.f32.mrb[7].mxu0  ;;  %v6342_v2 = vld [vmem:[#allocation8 + $0x308] ss:$12 sps:$4 sm:$0xff]   ;;  %v6339_v43 = vld [vmem:[#allocation8 + $0x3d8] ss:$12 sps:$4 sm:$0xff]  }
 0x20d   :  { %4480 = vmatmul.mubr.bf16.vlgmr.msra.gmra.mrb[8].mxu0 %v6939_v4  ;;  %5551 = vmatprep.subr.bf16.mxu1 %v6298_v5  ;;  %v2440_v28 = vmax.f32 %v5678_v30, 0.0  ;;  %v5680_v38 = vadd.f32 %v2342_v36, %v438_v21  ;;  %v6346_v5 = vld [vmem:[#allocation8 + $0x3f4] ss:$12 sps:$4 sm:$0xff]   ;;  %v6359_v20 = vld [vmem:[#allocation8 + $0x438] ss:$12 sps:$4 sm:$0xff]  }
 0x20e   :  { %4491 = vmatpush1.bf16.msra.mxu0 %v6294_v9  ;;  %4522 = vmatprep.mubr.bf16.mxu0 %v6924_v51  ;;  %v2451_v41 = vmax.f32 %v5679_v35, 0.0  ;;  %v6348_v9 = vld [vmem:[#allocation8 + $0x3f8] ss:$12 sps:$4 sm:$0xff]   ;;  %v6367_v21 = vld [vmem:[#allocation8 + $0x380] ss:$12 sps:$4 sm:$0xff]  }
 0x20f   :  { %4695 = vmatmul.mubr.bf16.vlgmr.msra.gmra.mrb[16].mxu1 %v6912_v57  ;;  %4492 = vmatprep.subr.bf16.mxu0 %v6301_v10  ;;  %v6313_v57 = vld [vmem:[#allocation8 + $0x290] ss:$12 sps:$4 sm:$0xff]   ;;  %v2452_v18 = vmax.f32 %v5680_v38, 0.0  ;;  %v6371_v24 = vld [vmem:[#allocation8 + $0x46c] ss:$12 sps:$4 sm:$0xff]  }
 0x210   :  { %5552 = vmatpush3.bf16.msra.mxu1 %v6302_v11  ;;  %4735 = vmatprep.mubr.bf16.mxu1 %v2458_v8  ;;  %v6950_v47 = vpack.c.bf16 %v2451_v41, %v2439_v33  ;;  %v6347_v8 = vld [vmem:[#allocation8 + $0x320] ss:$12 sps:$4 sm:$0xff]   ;;  %v6344_v10 = vld [vmem:[#allocation8 + $0x3f0] ss:$12 sps:$4 sm:$0xff]   ;;  %v6369_v27 = vld [vmem:[#allocation8 + $0x468] ss:$12 sps:$4 sm:$0xff]  }
 0x211   :  { %5553 = vmatprep.subr.bf16.mxu1 %v6303_v12  ;;  %v6952_v50 = vpack.c.bf16 %v2452_v18, %v2440_v28  ;;  %v6351_v11 = vld [vmem:[#allocation8 + $0x40c] ss:$12 sps:$4 sm:$0xff]   ;;  %v6373_v26 = vld [vmem:[#allocation8 + $0x470] ss:$12 sps:$4 sm:$0xff]   ;;  %v6378_v31 = vld [vmem:[#allocation8 + $0x548] ss:$12 sps:$4 sm:$0xff]  }
 0x212   :  { %4493 = vmatpush1.bf16.msra.mxu0 %v6299_v13  ;;  %v6352_v12 = vld [vmem:[#allocation8 + $0x338] ss:$12 sps:$4 sm:$0xff]   ;;  %v6353_v13 = vld [vmem:[#allocation8 + $0x410] ss:$12 sps:$4 sm:$0xff]   ;;  %v6382_v35 = vld [vmem:[#allocation8 + $0x488] ss:$12 sps:$4 sm:$0xff]  }
 0x213   :  { %4494 = vmatprep.subr.bf16.mxu0 %v6306_v14  ;;  %v6349_v14 = vld [vmem:[#allocation8 + $0x408] ss:$12 sps:$4 sm:$0xff]   ;;  %v6377_v30 = vld [vmem:[#allocation8 + $0x3b0] ss:$12 sps:$4 sm:$0xff]   ;;  %v6383_v36 = vld [vmem:[#allocation8 + $0x560] ss:$12 sps:$4 sm:$0xff]  }
 0x214   :  { %5554 = vmatpush3.bf16.msra.mxu1 %v6307_v7  ;;  %v6357_v7 = vld [vmem:[#allocation8 + $0x350] ss:$12 sps:$4 sm:$0xff]   ;;  %v6386_v28 = vld [vmem:[#allocation8 + $0x4b4] ss:$12 sps:$4 sm:$0xff]   ;;  %v6392_v18 = vld [vmem:[#allocation8 + $0x4b8] ss:$12 sps:$4 sm:$0xff]  }
 0x215   :  { %5555 = vmatprep.subr.bf16.mxu1 %v6308_v15  ;;  %v6358_v15 = vld [vmem:[#allocation8 + $0x428] ss:$12 sps:$4 sm:$0xff]   ;;  %v6387_v38 = vld [vmem:[#allocation8 + $0x4a0] ss:$12 sps:$4 sm:$0xff]   ;;  %v6384_v41 = vld [vmem:[#allocation8 + $0x4b0] ss:$12 sps:$4 sm:$0xff]  }
 0x216   :  { %4495 = vmatpush1.bf16.msra.mxu0 %v6304_v63  ;;  %v6361_v63 = vld [vmem:[#allocation8 + $0x43c] ss:$12 sps:$4 sm:$0xff]  }
 0x217   :  { %4496 = vmatprep.subr.bf16.mxu0 %v6311_v17  ;;  %v6362_v17 = vld [vmem:[#allocation8 + $0x368] ss:$12 sps:$4 sm:$0xff]  }
 0x218   :  { %5556 = vmatpush3.bf16.msra.mxu1 %v6312_v19  ;;  %v6363_v19 = vld [vmem:[#allocation8 + $0x440] ss:$12 sps:$4 sm:$0xff]   ;;  %v6381_v33 = vld [vmem:[#allocation8 + $0x49c] ss:$12 sps:$4 sm:$0xff]  }
 0x219   :  { %5557 = vmatprep.subr.bf16.mxu1 %v6313_v57  ;;  %v6366_v57 = vld [vmem:[#allocation8 + $0x454] ss:$12 sps:$4 sm:$0xff]  }
 0x21a   :  { %4497 = vmatpush1.bf16.msra.mxu0 %v6309_v22  ;;  %v6368_v22 = vld [vmem:[#allocation8 + $0x458] ss:$12 sps:$4 sm:$0xff]  }
 0x21b   :  { %4498 = vmatprep.subr.bf16.mxu0 %v6316_v23  ;;  %v6364_v23 = vld [vmem:[#allocation8 + $0x450] ss:$12 sps:$4 sm:$0xff]  }
 0x21c   :  { %5558 = vmatpush3.bf16.msra.mxu1 %v6317_v25  ;;  %v6372_v25 = vld [vmem:[#allocation8 + $0x398] ss:$12 sps:$4 sm:$0xff]  }
 0x21d   :  { %5559 = vmatprep.subr.bf16.mxu1 %v6318_v29  ;;  %v6376_v29 = vld [vmem:[#allocation8 + $0x484] ss:$12 sps:$4 sm:$0xff]  }
 0x21e   :  { %4499 = vmatpush1.bf16.msra.mxu0 %v6314_v32  ;;  %v6374_v32 = vld [vmem:[#allocation8 + $0x480] ss:$12 sps:$4 sm:$0xff]  }
 0x21f   :  { %4500 = vmatprep.subr.bf16.mxu0 %v6321_v37  ;;  %v6379_v37 = vld [vmem:[#allocation8 + $0x498] ss:$12 sps:$4 sm:$0xff]  }
 0x220   :  { %5560 = vmatpush3.bf16.msra.mxu1 %v6322_v39  ;;  %v6388_v39 = vld [vmem:[#allocation8 + $0x578] ss:$12 sps:$4 sm:$0xff]  }
 0x221   :  { %5561 = vmatprep.subr.bf16.mxu1 %v6323_v45  ;;  %v6391_v45 = vld [vmem:[#allocation8 + $0x4cc] ss:$12 sps:$4 sm:$0xff]  }
 0x222   :  { %4501 = vmatpush1.bf16.msra.mxu0 %v6319_v46  ;;  %v6393_v46 = vld [vmem:[#allocation8 + $0x590] ss:$12 sps:$4 sm:$0xff]  }
 0x223   :  { %4502 = vmatprep.subr.bf16.mxu0 %v6326_v49  ;;  %v6389_v49 = vld [vmem:[#allocation8 + $0x4c8] ss:$12 sps:$4 sm:$0xff]  }
 0x224   :  { %5562 = vmatpush3.bf16.msra.mxu1 %v6327_v52  ;;  %v6396_v52 = vld [vmem:[#allocation8 + $0x4e4] ss:$12 sps:$4 sm:$0xff]  }
 0x225   :  { %5563 = vmatprep.subr.bf16.mxu1 %v6328_v53  ;;  %v6398_v53 = vld [vmem:[#allocation8 + $0x5a8] ss:$12 sps:$4 sm:$0xff]  }
 0x226   :  { %4503 = vmatpush1.bf16.msra.mxu0 %v6324_v54  ;;  %v6394_v54 = vld [vmem:[#allocation8 + $0x4e0] ss:$12 sps:$4 sm:$0xff]  }
 0x227   :  { %4504 = vmatprep.subr.bf16.mxu0 %v6331_v55  ;;  %v6401_v55 = vld [vmem:[#allocation8 + $0x4fc] ss:$12 sps:$4 sm:$0xff]  }
 0x228   :  { %5564 = vmatpush3.bf16.msra.mxu1 %v6332_v56  ;;  %v425_v56 = vsub.s32 6, %v6898_v40 }
 0x229   :  { %5565 = vmatprep.subr.bf16.mxu1 %v6333_v58  ;;  %v6402_v58 = vld [vmem:[#allocation8 + $0x4e8] ss:$12 sps:$4 sm:$0xff]  }
 0x22a   :  { %4505 = vmatpush1.bf16.msra.mxu0 %v6329_v59  ;;  %v429_v59 = vsub.s32 7, %v6898_v40  ;;  %v6521_v40 = vld [vmem:[#allocation8 + $0x784] ss:$12 sps:$4 sm:$0xff]  }
 0x22b   :  { %4506 = vmatprep.subr.bf16.mxu0 %v6336_v60  ;;  %v6403_v60 = vld [vmem:[#allocation8 + $0x5c0] ss:$12 sps:$4 sm:$0xff]  }
 0x22c   :  { %5566 = vmatpush3.bf16.msra.mxu1 %v6337_v61  ;;  %v6399_v61 = vld [vmem:[#allocation8 + $0x4f8] ss:$12 sps:$4 sm:$0xff]  }
 0x22d   :  { %5573 = vmatprep.subr.bf16.mxu1 %v6338_v62  ;;  %v6570_v62 = vld [vmem:[#allocation7] sm:$0xff] }
 0x22e   :  { %4507 = vmatpush1.bf16.msra.mxu0 %v6334_v0  ;;  %v426_v0 = vrot.slane %v6570_v62, %v425_v56  ;;  %v6448_v56 = vld [vmem:[#allocation8 + $0x758] ss:$12 sps:$4 sm:$0xff]  }
 0x22f   :  { %4736 = vmatmul.mubr.bf16.vlgmr.msra.gmra.mrb[20].mxu1 %v6939_v4  ;;  %4508 = vmatprep.subr.bf16.mxu0 %v6341_v1  ;;  %v6356_v4 = vld [vmem:[#allocation8 + $0x424] ss:$12 sps:$4 sm:$0xff]   ;;  %v6406_v1 = vld [vmem:[#allocation8 + $0x514] ss:$12 sps:$4 sm:$0xff]  }
 0x230   :  { %5574 = vmatpush3.bf16.msra.mxu1 %v6342_v2  ;;  %4776 = vmatprep.mubr.bf16.mxu1 %v6924_v51  ;;  %v6354_v51 = vld [vmem:[#allocation8 + $0x420] ss:$12 sps:$4 sm:$0xff]   ;;  %v430_v2 = vrot.slane %v6570_v62, %v429_v59  ;;  %v6449_v62 = vld [vmem:[#allocation8 + $0x5e8] ss:$12 sps:$4 sm:$0xff]  }
 0x231   :  { %5575 = vmatprep.subr.bf16.mxu1 %v6343_v3  ;;  %v6407_v3 = vld [vmem:[#allocation8 + $0x500] ss:$12 sps:$4 sm:$0xff]  }
 0x232   :  { %4509 = vmatpush1.bf16.msra.mxu0 %v6339_v43  ;;  %v6408_v43 = vld [vmem:[#allocation8 + $0x5d8] ss:$12 sps:$4 sm:$0xff]  }
 0x233   :  { %4510 = vmatprep.subr.bf16.mxu0 %v6346_v5  ;;  %v6451_v59 = vld [vmem:[#allocation8 + $0x5ec] ss:$12 sps:$4 sm:$0xff]  }
 0x234   :  { %5576 = vmatpush3.bf16.msra.mxu1 %v6347_v8  ;;  %v6404_v8 = vld [vmem:[#allocation8 + $0x510] ss:$12 sps:$4 sm:$0xff]  }
 0x235   :  { %5577 = vmatprep.subr.bf16.mxu1 %v6348_v9 }
 0x236   :  { %4511 = vmatpush1.bf16.msra.mxu0 %v6344_v10 }
 0x237   :  { %4512 = vmatprep.subr.bf16.mxu0 %v6351_v11  ;;  %v6411_v11 = vld [vmem:[#allocation8 + $0x52c] ss:$12 sps:$4 sm:$0xff]  }
 0x238   :  { %5578 = vmatpush3.bf16.msra.mxu1 %v6352_v12 }
 0x239   :  { %5579 = vmatprep.subr.bf16.mxu1 %v6353_v13 }
 0x23a   :  { %4513 = vmatpush1.bf16.msra.mxu0 %v6349_v14  ;;  %v6412_v14 = vld [vmem:[#allocation8 + $0x518] ss:$12 sps:$4 sm:$0xff]  }
 0x23b   :  { %4514 = vmatprep.subr.bf16.mxu0 %v6356_v4 }
 0x23c   :  { %5580 = vmatpush3.bf16.msra.mxu1 %v6357_v7 }
 0x23d   :  { %5581 = vmatprep.subr.bf16.mxu1 %v6358_v15 }
 0x23e   :  { %4515 = vmatpush1.bf16.msra.mxu0 %v6354_v51  ;;  %v6413_v51 = vld [vmem:[#allocation8 + $0x5f0] ss:$12 sps:$4 sm:$0xff]  }
 0x23f   :  { %4516 = vmatprep.subr.bf16.mxu0 %v6361_v63 }
 0x240   :  { %5582 = vmatpush3.bf16.msra.mxu1 %v6362_v17  ;;  %v6409_v17 = vld [vmem:[#allocation8 + $0x528] ss:$12 sps:$4 sm:$0xff]  }
 0x241   :  { %5583 = vmatprep.subr.bf16.mxu1 %v6363_v19 }
 0x242   :  { %4517 = vmatpush1.bf16.msra.mxu0 %v6359_v20  ;;  %v6416_v20 = vld [vmem:[#allocation8 + $0x544] ss:$12 sps:$4 sm:$0xff]  }
 0x243   :  { %4518 = vmatprep.subr.bf16.mxu0 %v6366_v57 }
 0x244   :  { %5584 = vmatpush3.bf16.msra.mxu1 %v6367_v21 }
 0x245   :  { %5585 = vmatprep.subr.bf16.mxu1 %v6368_v22  ;;  %v6417_v22 = vld [vmem:[#allocation8 + $0x530] ss:$12 sps:$4 sm:$0xff]  }
 0x246   :  { %4519 = vmatpush1.bf16.msra.mxu0 %v6364_v23 }
 0x247   :  { %4520 = vmatprep.subr.bf16.mxu0 %v6371_v24  ;;  %v6418_v24 = vld [vmem:[#allocation8 + $0x6c8] ss:$12 sps:$4 sm:$0xff]  }
 0x248   :  { %5586 = vmatpush3.bf16.msra.mxu1 %v6372_v25 }
 0x249   :  { %5587 = vmatprep.subr.bf16.mxu1 %v6373_v26  ;;  %v6414_v26 = vld [vmem:[#allocation8 + $0x540] ss:$12 sps:$4 sm:$0xff]  }
 0x24a   :  { %4521 = vmatpush1.bf16.msra.mxu0 %v6369_v27  ;;  %v6421_v27 = vld [vmem:[#allocation8 + $0x55c] ss:$12 sps:$4 sm:$0xff]  }
 0x24b   :  { %4533 = vmatprep.subr.bf16.mxu0 %v6376_v29  ;;  %v6422_v29 = vld [vmem:[#allocation8 + $0x608] ss:$12 sps:$4 sm:$0xff]  }
 0x24c   :  { %5588 = vmatpush3.bf16.msra.mxu1 %v6377_v30  ;;  %v6423_v30 = vld [vmem:[#allocation8 + $0x6e0] ss:$12 sps:$4 sm:$0xff]  }
 0x24d   :  { %4523 = vmatmul.mubr.bf16.vlgmr.msra.gmra.mrb[8].mxu0 %v6922_v48  ;;  %5595 = vmatprep.subr.bf16.mxu1 %v6378_v31  ;;  %v6419_v31 = vld [vmem:[#allocation8 + $0x558] ss:$12 sps:$4 sm:$0xff]  }
 0x24e   :  { %4534 = vmatpush1.bf16.msra.mxu0 %v6374_v32  ;;  %v6426_v32 = vld [vmem:[#allocation8 + $0x574] ss:$12 sps:$4 sm:$0xff]  }
 0x24f   :  { %4777 = vmatmul.mubr.bf16.vlgmr.msra.gmra.mrb[24].mxu1 %v6922_v48  ;;  %4535 = vmatprep.subr.bf16.mxu0 %v6381_v33  ;;  %v6397_v48 = vld [vmem:[#allocation8 + $0x4d0] ss:$12 sps:$4 sm:$0xff]   ;;  %v6427_v33 = vld [vmem:[#allocation8 + $0x620] ss:$12 sps:$4 sm:$0xff]  }
 0x250   :  { %5596 = vmatpush3.bf16.msra.mxu1 %v6382_v35  ;;  %v6428_v35 = vld [vmem:[#allocation8 + $0x6f8] ss:$12 sps:$4 sm:$0xff]  }
 0x251   :  { %5597 = vmatprep.subr.bf16.mxu1 %v6383_v36  ;;  %v6424_v36 = vld [vmem:[#allocation8 + $0x570] ss:$12 sps:$4 sm:$0xff]  }
 0x252   :  { %4536 = vmatpush1.bf16.msra.mxu0 %v6379_v37  ;;  %v6431_v37 = vld [vmem:[#allocation8 + $0x58c] ss:$12 sps:$4 sm:$0xff]  }
 0x253   :  { %4537 = vmatprep.subr.bf16.mxu0 %v6386_v28  ;;  %v6432_v28 = vld [vmem:[#allocation8 + $0x638] ss:$12 sps:$4 sm:$0xff]  }
 0x254   :  { %5598 = vmatpush3.bf16.msra.mxu1 %v6387_v38  ;;  %v6433_v38 = vld [vmem:[#allocation8 + $0x710] ss:$12 sps:$4 sm:$0xff]  }
 0x255   :  { %5599 = vmatprep.subr.bf16.mxu1 %v6388_v39  ;;  %v6429_v39 = vld [vmem:[#allocation8 + $0x588] ss:$12 sps:$4 sm:$0xff]  }
 0x256   :  { %4538 = vmatpush1.bf16.msra.mxu0 %v6384_v41  ;;  %v6436_v41 = vld [vmem:[#allocation8 + $0x5a4] ss:$12 sps:$4 sm:$0xff]  }
 0x257   :  { %4539 = vmatprep.subr.bf16.mxu0 %v6391_v45  ;;  %v6437_v45 = vld [vmem:[#allocation8 + $0x650] ss:$12 sps:$4 sm:$0xff]  }
 0x258   :  { %5600 = vmatpush3.bf16.msra.mxu1 %v6392_v18  ;;  %v6438_v18 = vld [vmem:[#allocation8 + $0x728] ss:$12 sps:$4 sm:$0xff]  }
 0x259   :  { %5601 = vmatprep.subr.bf16.mxu1 %v6393_v46  ;;  %v6434_v46 = vld [vmem:[#allocation8 + $0x5a0] ss:$12 sps:$4 sm:$0xff]  }
 0x25a   :  { %4540 = vmatpush1.bf16.msra.mxu0 %v6389_v49  ;;  %v6441_v49 = vld [vmem:[#allocation8 + $0x5bc] ss:$12 sps:$4 sm:$0xff]  }
 0x25b   :  { %4541 = vmatprep.subr.bf16.mxu0 %v6396_v52  ;;  %v6442_v52 = vld [vmem:[#allocation8 + $0x668] ss:$12 sps:$4 sm:$0xff]  }
 0x25c   :  { %5602 = vmatpush3.bf16.msra.mxu1 %v6397_v48  ;;  %v6443_v48 = vld [vmem:[#allocation8 + $0x740] ss:$12 sps:$4 sm:$0xff]  }
 0x25d   :  { %5603 = vmatprep.subr.bf16.mxu1 %v6398_v53  ;;  %v6439_v53 = vld [vmem:[#allocation8 + $0x5b8] ss:$12 sps:$4 sm:$0xff]  }
 0x25e   :  { %4542 = vmatpush1.bf16.msra.mxu0 %v6394_v54  ;;  %v6446_v54 = vld [vmem:[#allocation8 + $0x5d4] ss:$12 sps:$4 sm:$0xff]  }
 0x25f   :  { %4543 = vmatprep.subr.bf16.mxu0 %v6401_v55  ;;  %v6447_v55 = vld [vmem:[#allocation8 + $0x680] ss:$12 sps:$4 sm:$0xff]  }
 0x260   :  { %5604 = vmatpush3.bf16.msra.mxu1 %v6402_v58  ;;  %v6444_v58 = vld [vmem:[#allocation8 + $0x5d0] ss:$12 sps:$4 sm:$0xff]  }
 0x261   :  { %5605 = vmatprep.subr.bf16.mxu1 %v6403_v60  ;;  %v6452_v60 = vld [vmem:[#allocation8 + $0x698] ss:$12 sps:$4 sm:$0xff]  }
 0x262   :  { %4544 = vmatpush1.bf16.msra.mxu0 %v6399_v61  ;;  %v2250_v5 = vpop.f32.mrb[8].mxu1  ;;  %v6453_v61 = vld [vmem:[#allocation8 + $0x770] ss:$12 sps:$4 sm:$0xff]  }
 0x263   :  { %v5673_v9 = vadd.f32 %v2250_v5, %v426_v0  ;;  %v2252_v10 = vpop.f32.mrb[9].mxu1  ;;  %4545 = vmatprep.subr.bf16.mxu0 %v6406_v1  ;;  %v6457_v1 = vld [vmem:[#allocation8 + $0x6b0] ss:$12 sps:$4 sm:$0xff]   ;;  %v6483_v5 = vld [vmem:[#allocation8 + $0x788] ss:$12 sps:$4 sm:$0xff]  }
 0x264   :  { %v5674_v12 = vadd.f32 %v2252_v10, %v430_v2  ;;  %v2254_v13 = vpop.f32.mrb[10].mxu1  ;;  %5606 = vmatpush3.bf16.msra.mxu1 %v6407_v3  ;;  %v6454_v3 = vld [vmem:[#allocation8 + $0x600] ss:$12 sps:$4 sm:$0xff]  }
 0x265   :  { %v2437_v4 = vmax.f32 %v5673_v9, 0.0  ;;  %v5675_v7 = vadd.f32 %v2254_v13, %v426_v0  ;;  %v2256_v15 = vpop.f32.mrb[11].mxu1  ;;  %5607 = vmatprep.subr.bf16.mxu1 %v6408_v43  ;;  %v6456_v0 = vld [vmem:[#allocation8 + $0x604] ss:$12 sps:$4 sm:$0xff]   ;;  %v6460_v43 = vld [vmem:[#allocation8 + $0x61c] ss:$12 sps:$4 sm:$0xff]  }
 0x266   :  { %v5676_v63 = vadd.f32 %v2256_v15, %v430_v2  ;;  %4546 = vmatpush1.bf16.msra.mxu0 %v6404_v8  ;;  %v2438_v57 = vmax.f32 %v5674_v12, 0.0  ;;  %v6482_v2 = vld [vmem:[#allocation8 + $0x848] ss:$12 sps:$4 sm:$0xff]   ;;  %v6487_v8 = vld [vmem:[#allocation8 + $0x860] ss:$12 sps:$4 sm:$0xff]  }
 0x267   :  { %v2449_v19 = vmax.f32 %v5675_v7, 0.0  ;;  %4547 = vmatprep.subr.bf16.mxu0 %v6411_v11  ;;  %v6458_v9 = vld [vmem:[#allocation8 + $0x618] ss:$12 sps:$4 sm:$0xff]   ;;  %v6463_v10 = vld [vmem:[#allocation8 + $0x634] ss:$12 sps:$4 sm:$0xff]  }
 0x268   :  { %v2450_v21 = vmax.f32 %v5676_v63, 0.0  ;;  %5608 = vmatpush3.bf16.msra.mxu1 %v6412_v14  ;;  %v6488_v11 = vld [vmem:[#allocation8 + $0x7a0] ss:$12 sps:$4 sm:$0xff]   ;;  %v6492_v12 = vld [vmem:[#allocation8 + $0x878] ss:$12 sps:$4 sm:$0xff]  }
 0x269   :  { %v6960_v23 = vpack.c.bf16 %v2449_v19, %v2437_v4  ;;  %5609 = vmatprep.subr.bf16.mxu1 %v6413_v51  ;;  %v6461_v13 = vld [vmem:[#allocation8 + $0x630] ss:$12 sps:$4 sm:$0xff]   ;;  %v6466_v14 = vld [vmem:[#allocation8 + $0x64c] ss:$12 sps:$4 sm:$0xff]   ;;  %v6464_v15 = vld [vmem:[#allocation8 + $0x648] ss:$12 sps:$4 sm:$0xff]  }
 0x26a   :  { %v2462_v25 = vpack.c.bf16 %v2450_v21, %v2438_v57  ;;  %4548 = vmatpush1.bf16.msra.mxu0 %v6409_v17  ;;  %v6493_v4 = vld [vmem:[#allocation8 + $0x7b8] ss:$12 sps:$4 sm:$0xff]   ;;  %v6497_v7 = vld [vmem:[#allocation8 + $0x890] ss:$12 sps:$4 sm:$0xff]   ;;  %v6502_v63 = vld [vmem:[#allocation8 + $0x8a8] ss:$12 sps:$4 sm:$0xff]  }
 0x26b   :  { %4549 = vmatprep.subr.bf16.mxu0 %v6416_v20  ;;  %v6498_v51 = vld [vmem:[#allocation8 + $0x7d0] ss:$12 sps:$4 sm:$0xff]   ;;  %v6467_v17 = vld [vmem:[#allocation8 + $0x660] ss:$12 sps:$4 sm:$0xff]   ;;  %v6503_v20 = vld [vmem:[#allocation8 + $0x7e8] ss:$12 sps:$4 sm:$0xff]  }
 0x26c   :  { %4565 = vmatprep.mubr.bf16.mxu0 %v2462_v25  ;;  %5610 = vmatpush3.bf16.msra.mxu1 %v6417_v22  ;;  %v6472_v19 = vld [vmem:[#allocation8 + $0x67c] ss:$12 sps:$4 sm:$0xff]   ;;  %v6507_v57 = vld [vmem:[#allocation8 + $0x8c0] ss:$12 sps:$4 sm:$0xff]   ;;  %v6470_v21 = vld [vmem:[#allocation8 + $0x678] ss:$12 sps:$4 sm:$0xff]  }
 0x26d   :  { %4817 = vmatprep.mubr.bf16.mxu1 %v2462_v25  ;;  %5617 = vmatprep.subr.bf16.mxu1 %v6418_v24  ;;  %v6475_v22 = vld [vmem:[#allocation8 + $0x694] ss:$12 sps:$4 sm:$0xff]   ;;  %v6512_v24 = vld [vmem:[#allocation8 + $0x8d8] ss:$12 sps:$4 sm:$0xff]   ;;  %v6473_v25 = vld [vmem:[#allocation8 + $0x690] ss:$12 sps:$4 sm:$0xff]  }
 0x26e   :  { %4550 = vmatpush1.bf16.msra.mxu0 %v6414_v26  ;;  %v6478_v26 = vld [vmem:[#allocation8 + $0x6ac] ss:$12 sps:$4 sm:$0xff]  }
 0x26f   :  { %4818 = vmatmul.mubr.bf16.vlgmr.msra.gmra.mrb[28].mxu1 %v6960_v23  ;;  %4551 = vmatprep.subr.bf16.mxu0 %v6421_v27  ;;  %v6513_v27 = vld [vmem:[#allocation8 + $0x818] ss:$12 sps:$4 sm:$0xff]  }
 0x270   :  { %5618 = vmatpush3.bf16.msra.mxu1 %v6422_v29  ;;  %4858 = vmatprep.mubr.bf16.mxu1 %v6952_v50  ;;  %v6517_v29 = vld [vmem:[#allocation8 + $0x8f0] ss:$12 sps:$4 sm:$0xff]  }
 0x271   :  { %5619 = vmatprep.subr.bf16.mxu1 %v6423_v30  ;;  %v6476_v30 = vld [vmem:[#allocation8 + $0x6a8] ss:$12 sps:$4 sm:$0xff]  }
 0x272   :  { %4552 = vmatpush1.bf16.msra.mxu0 %v6419_v31  ;;  %v6481_v31 = vld [vmem:[#allocation8 + $0x6c4] ss:$12 sps:$4 sm:$0xff]  }
 0x273   :  { %4553 = vmatprep.subr.bf16.mxu0 %v6426_v32  ;;  %v6518_v32 = vld [vmem:[#allocation8 + $0x830] ss:$12 sps:$4 sm:$0xff]  }
 0x274   :  { %5620 = vmatpush3.bf16.msra.mxu1 %v6427_v33  ;;  %v6479_v33 = vld [vmem:[#allocation8 + $0x6c0] ss:$12 sps:$4 sm:$0xff]  }
 0x275   :  { %5621 = vmatprep.subr.bf16.mxu1 %v6428_v35  ;;  %v6486_v35 = vld [vmem:[#allocation8 + $0x6dc] ss:$12 sps:$4 sm:$0xff]  }
 0x276   :  { %4554 = vmatpush1.bf16.msra.mxu0 %v6424_v36  ;;  %v6484_v36 = vld [vmem:[#allocation8 + $0x6d8] ss:$12 sps:$4 sm:$0xff]  }
 0x277   :  { %4555 = vmatprep.subr.bf16.mxu0 %v6431_v37  ;;  %v6491_v37 = vld [vmem:[#allocation8 + $0x6f4] ss:$12 sps:$4 sm:$0xff]  }
 0x278   :  { %5622 = vmatpush3.bf16.msra.mxu1 %v6432_v28  ;;  %v6489_v28 = vld [vmem:[#allocation8 + $0x6f0] ss:$12 sps:$4 sm:$0xff]  }
 0x279   :  { %5623 = vmatprep.subr.bf16.mxu1 %v6433_v38  ;;  %v6496_v38 = vld [vmem:[#allocation8 + $0x70c] ss:$12 sps:$4 sm:$0xff]  }
 0x27a   :  { %4556 = vmatpush1.bf16.msra.mxu0 %v6429_v39  ;;  %v6494_v39 = vld [vmem:[#allocation8 + $0x708] ss:$12 sps:$4 sm:$0xff]  }
 0x27b   :  { %4557 = vmatprep.subr.bf16.mxu0 %v6436_v41  ;;  %v6501_v41 = vld [vmem:[#allocation8 + $0x724] ss:$12 sps:$4 sm:$0xff]  }
 0x27c   :  { %5624 = vmatpush3.bf16.msra.mxu1 %v6437_v45  ;;  %v6499_v45 = vld [vmem:[#allocation8 + $0x720] ss:$12 sps:$4 sm:$0xff]  }
 0x27d   :  { %5625 = vmatprep.subr.bf16.mxu1 %v6438_v18  ;;  %v6506_v18 = vld [vmem:[#allocation8 + $0x73c] ss:$12 sps:$4 sm:$0xff]  }
 0x27e   :  { %4558 = vmatpush1.bf16.msra.mxu0 %v6434_v46  ;;  %v6504_v46 = vld [vmem:[#allocation8 + $0x738] ss:$12 sps:$4 sm:$0xff]  }
 0x27f   :  { %4559 = vmatprep.subr.bf16.mxu0 %v6441_v49  ;;  %v442_v49 = vrot.slane %v6944_v16, %v6931_v42 }
 0x280   :  { %5626 = vmatpush3.bf16.msra.mxu1 %v6442_v52  ;;  %v6511_v52 = vld [vmem:[#allocation8 + $0x754] ss:$12 sps:$4 sm:$0xff]  }
 0x281   :  { %5627 = vmatprep.subr.bf16.mxu1 %v6443_v48  ;;  %v446_v48 = vrot.slane %v6944_v16, %v413_v34 }
 0x282   :  { %4560 = vmatpush1.bf16.msra.mxu0 %v6439_v53 }
 0x283   :  { %4561 = vmatprep.subr.bf16.mxu0 %v6446_v54  ;;  %v6509_v54 = vld [vmem:[#allocation8 + $0x750] ss:$12 sps:$4 sm:$0xff]  }
 0x284   :  { %5628 = vmatpush3.bf16.msra.mxu1 %v6447_v55 }
 0x285   :  { %5629 = vmatprep.subr.bf16.mxu1 %v6448_v56 }
 0x286   :  { %4562 = vmatpush1.bf16.msra.mxu0 %v6444_v58  ;;  %v6516_v58 = vld [vmem:[#allocation8 + $0x76c] ss:$12 sps:$4 sm:$0xff]  }
 0x287   :  { %4563 = vmatprep.subr.bf16.mxu0 %v6451_v59 }
 0x288   :  { %5630 = vmatpush3.bf16.msra.mxu1 %v6452_v60 }
 0x289   :  { %5631 = vmatprep.subr.bf16.mxu1 %v6453_v61 }
 0x28a   :  { %4564 = vmatpush1.bf16.msra.mxu0 %v6449_v62 }
 0x28b   :  { %4576 = vmatprep.subr.bf16.mxu0 %v6456_v0 }
 0x28c   :  { %5632 = vmatpush3.bf16.msra.mxu1 %v6457_v1 }
 0x28d   :  { %4566 = vmatmul.mubr.bf16.vlgmr.msra.gmra.mrb[8].mxu0 %v6960_v23  ;;  %5639 = vmatprep.subr.bf16.mxu1 %v6482_v2  ;;  %v6508_v23 = vld [vmem:[#allocation8 + $0x800] ss:$12 sps:$4 sm:$0xff]  }
 0x28e   :  { %4577 = vmatpush1.bf16.msra.mxu0 %v6454_v3  ;;  %4608 = vmatprep.mubr.bf16.mxu0 %v6952_v50  ;;  %v6469_v50 = vld [vmem:[#allocation8 + $0x664] ss:$12 sps:$4 sm:$0xff]   ;;  %v6514_v3 = vld [vmem:[#allocation8 + $0x768] ss:$12 sps:$4 sm:$0xff]  }
 0x28f   :  { %4859 = vmatmul.mubr.bf16.vlgmr.msra.gmra.mrb[32].mxu1 %v6950_v47  ;;  %4578 = vmatprep.subr.bf16.mxu0 %v6460_v43 }
 0x290   :  { %5640 = vmatpush3.bf16.msra.mxu1 %v6483_v5 }
 0x291   :  { %5641 = vmatprep.subr.bf16.mxu1 %v6487_v8  ;;  %v6519_v8 = vld [vmem:[#allocation8 + $0x780] ss:$12 sps:$4 sm:$0xff]  }
 0x292   :  { %4579 = vmatpush1.bf16.msra.mxu0 %v6458_v9  ;;  %v6524_v9 = vld [vmem:[#allocation8 + $0x79c] ss:$12 sps:$4 sm:$0xff]  }
 0x293   :  { %4580 = vmatprep.subr.bf16.mxu0 %v6463_v10  ;;  %v6522_v10 = vld [vmem:[#allocation8 + $0x798] ss:$12 sps:$4 sm:$0xff]  }
 0x294   :  { %5642 = vmatpush3.bf16.msra.mxu1 %v6488_v11  ;;  %v6527_v11 = vld [vmem:[#allocation8 + $0x7b4] ss:$12 sps:$4 sm:$0xff]  }
 0x295   :  { %5643 = vmatprep.subr.bf16.mxu1 %v6492_v12  ;;  %v6525_v12 = vld [vmem:[#allocation8 + $0x7b0] ss:$12 sps:$4 sm:$0xff]  }
 0x296   :  { %4581 = vmatpush1.bf16.msra.mxu0 %v6461_v13  ;;  %v6530_v13 = vld [vmem:[#allocation8 + $0x7cc] ss:$12 sps:$4 sm:$0xff]  }
 0x297   :  { %4582 = vmatprep.subr.bf16.mxu0 %v6466_v14  ;;  %v6528_v14 = vld [vmem:[#allocation8 + $0x7c8] ss:$12 sps:$4 sm:$0xff]  }
 0x298   :  { %5644 = vmatpush3.bf16.msra.mxu1 %v6493_v4  ;;  %v6533_v4 = vld [vmem:[#allocation8 + $0x7e4] ss:$12 sps:$4 sm:$0xff]  }
 0x299   :  { %5645 = vmatprep.subr.bf16.mxu1 %v6497_v7  ;;  %v6531_v7 = vld [vmem:[#allocation8 + $0x7e0] ss:$12 sps:$4 sm:$0xff]  }
 0x29a   :  { %4583 = vmatpush1.bf16.msra.mxu0 %v6464_v15  ;;  %v6536_v15 = vld [vmem:[#allocation8 + $0x7fc] ss:$12 sps:$4 sm:$0xff]  }
 0x29b   :  { %4584 = vmatprep.subr.bf16.mxu0 %v6469_v50  ;;  %v6539_v50 = vld [vmem:[#allocation8 + $0x814] ss:$12 sps:$4 sm:$0xff]  }
 0x29c   :  { %5646 = vmatpush3.bf16.msra.mxu1 %v6498_v51 }
 0x29d   :  { %5647 = vmatprep.subr.bf16.mxu1 %v6502_v63  ;;  %v6537_v63 = vld [vmem:[#allocation8 + $0x810] ss:$12 sps:$4 sm:$0xff]  }
 0x29e   :  { %4585 = vmatpush1.bf16.msra.mxu0 %v6467_v17 }
 0x29f   :  { %4586 = vmatprep.subr.bf16.mxu0 %v6472_v19  ;;  %v6542_v19 = vld [vmem:[#allocation8 + $0x82c] ss:$12 sps:$4 sm:$0xff]  }
 0x2a0   :  { %5648 = vmatpush3.bf16.msra.mxu1 %v6503_v20 }
 0x2a1   :  { %5649 = vmatprep.subr.bf16.mxu1 %v6507_v57 }
 0x2a2   :  { %4587 = vmatpush1.bf16.msra.mxu0 %v6470_v21 }
 0x2a3   :  { %4588 = vmatprep.subr.bf16.mxu0 %v6475_v22 }
 0x2a4   :  { %5650 = vmatpush3.bf16.msra.mxu1 %v6508_v23  ;;  %v6540_v23 = vld [vmem:[#allocation8 + $0x828] ss:$12 sps:$4 sm:$0xff]  }
 0x2a5   :  { %5651 = vmatprep.subr.bf16.mxu1 %v6512_v24  ;;  %v6545_v24 = vld [vmem:[#allocation8 + $0x844] ss:$12 sps:$4 sm:$0xff]  }
 0x2a6   :  { %4589 = vmatpush1.bf16.msra.mxu0 %v6473_v25  ;;  %v6543_v25 = vld [vmem:[#allocation8 + $0x840] ss:$12 sps:$4 sm:$0xff]  }
 0x2a7   :  { %4590 = vmatprep.subr.bf16.mxu0 %v6478_v26  ;;  %v6548_v26 = vld [vmem:[#allocation8 + $0x85c] ss:$12 sps:$4 sm:$0xff]  }
 0x2a8   :  { %5652 = vmatpush3.bf16.msra.mxu1 %v6513_v27  ;;  %v6546_v27 = vld [vmem:[#allocation8 + $0x858] ss:$12 sps:$4 sm:$0xff]  }
 0x2a9   :  { %5653 = vmatprep.subr.bf16.mxu1 %v6517_v29  ;;  %v6551_v29 = vld [vmem:[#allocation8 + $0x874] ss:$12 sps:$4 sm:$0xff]  }
 0x2aa   :  { %4591 = vmatpush1.bf16.msra.mxu0 %v6476_v30  ;;  %v6549_v30 = vld [vmem:[#allocation8 + $0x870] ss:$12 sps:$4 sm:$0xff]  }
 0x2ab   :  { %4592 = vmatprep.subr.bf16.mxu0 %v6481_v31  ;;  %v6554_v31 = vld [vmem:[#allocation8 + $0x88c] ss:$12 sps:$4 sm:$0xff]  }
 0x2ac   :  { %5654 = vmatpush3.bf16.msra.mxu1 %v6518_v32  ;;  %v6552_v32 = vld [vmem:[#allocation8 + $0x888] ss:$12 sps:$4 sm:$0xff]  }
 0x2ae   :  { %4593 = vmatpush1.bf16.msra.mxu0 %v6479_v33  ;;  %v6557_v33 = vld [vmem:[#allocation8 + $0x8a4] ss:$12 sps:$4 sm:$0xff]  }
 0x2af   :  { %4594 = vmatprep.subr.bf16.mxu0 %v6486_v35  ;;  %v6555_v35 = vld [vmem:[#allocation8 + $0x8a0] ss:$12 sps:$4 sm:$0xff]  }
 0x2b2   :  { %4595 = vmatpush1.bf16.msra.mxu0 %v6484_v36  ;;  %v6560_v36 = vld [vmem:[#allocation8 + $0x8bc] ss:$12 sps:$4 sm:$0xff]  }
 0x2b3   :  { %4596 = vmatprep.subr.bf16.mxu0 %v6491_v37  ;;  %v6976_v37 = vld [vmem:[#allocation10] sm:$0x7] }
 0x2b6   :  { %4597 = vmatpush1.bf16.msra.mxu0 %v6489_v28  ;;  %v6558_v28 = vld [vmem:[#allocation8 + $0x8b8] ss:$12 sps:$4 sm:$0xff]  }
 0x2b7   :  { %4598 = vmatprep.subr.bf16.mxu0 %v6496_v38  ;;  %v6563_v38 = vld [vmem:[#allocation8 + $0x8d4] ss:$12 sps:$4 sm:$0xff]  }
 0x2ba   :  { %4599 = vmatpush1.bf16.msra.mxu0 %v6494_v39  ;;  %v2864_v39 = vrot.slane %v6976_v37, %v6931_v42 }
 0x2bb   :  { %4600 = vmatprep.subr.bf16.mxu0 %v6501_v41 }
 0x2be   :  { %4601 = vmatpush1.bf16.msra.mxu0 %v6499_v45  ;;  %v6561_v45 = vld [vmem:[#allocation8 + $0x8d0] ss:$12 sps:$4 sm:$0xff]  }
 0x2bf   :  { %4602 = vmatprep.subr.bf16.mxu0 %v6506_v18 }
 0x2c2   :  { %4603 = vmatpush1.bf16.msra.mxu0 %v6504_v46  ;;  %v2422_v53 = vpop.f32.mrb[12].mxu1  ;;  %v6566_v46 = vld [vmem:[#allocation8 + $0x8ec] ss:$12 sps:$4 sm:$0xff]  }
 0x2c3   :  { %v5681_v55 = vadd.f32 %v2422_v53, %v442_v49  ;;  %v2424_v56 = vpop.f32.mrb[13].mxu1  ;;  %4604 = vmatprep.subr.bf16.mxu0 %v6511_v52 }
 0x2c4   :  { %v5682_v59 = vadd.f32 %v2424_v56, %v446_v48  ;;  %v2426_v60 = vpop.f32.mrb[14].mxu1 }
 0x2c5   :  { %v2441_v61 = vmax.f32 %v5681_v55, 0.0  ;;  %v5683_v62 = vadd.f32 %v2426_v60, %v442_v49  ;;  %v2428_v0 = vpop.f32.mrb[15].mxu1 }
 0x2c6   :  { %v2442_v1 = vmax.f32 %v5682_v59, 0.0  ;;  %v5684_v2 = vadd.f32 %v2428_v0, %v446_v48  ;;  %4605 = vmatpush1.bf16.msra.mxu0 %v6509_v54 }
 0x2c7   :  { %v2453_v43 = vmax.f32 %v5683_v62, 0.0  ;;  %4606 = vmatprep.subr.bf16.mxu0 %v6516_v58  ;;  %v6564_v58 = vld [vmem:[#allocation8 + $0x8e8] ss:$12 sps:$4 sm:$0xff]  }
 0x2c8   :  { %v2454_v34 = vmax.f32 %v5684_v2, 0.0 }
 0x2c9   :  { %v6972_v16 = vpack.c.bf16 %v2453_v43, %v2441_v61 }
 0x2ca   :  { %v2466_v5 = vpack.c.bf16 %v2454_v34, %v2442_v1  ;;  %4607 = vmatpush1.bf16.msra.mxu0 %v6514_v3 }
 0x2cb   :  { %4619 = vmatprep.subr.bf16.mxu0 %v6521_v40 }
 0x2cc   :  { %4899 = vmatprep.mubr.bf16.mxu1 %v2466_v5 }
 0x2cd   :  { %4609 = vmatmul.mubr.bf16.vlgmr.msra.gmra.mrb[8].mxu0 %v6950_v47  ;;  %4900 = vmatmul.mubr.bf16.vlgmr.msra.gmra.mrb[36].mxu1 %v6972_v16  ;;  %v6534_v47 = vld [vmem:[#allocation8 + $0x7f8] ss:$12 sps:$4 sm:$0xff]  }
 0x2ce   :  { %4620 = vmatpush1.bf16.msra.mxu0 %v6519_v8  ;;  %4651 = vmatprep.mubr.bf16.mxu0 %v2466_v5 }
 0x2cf   :  { %4621 = vmatprep.subr.bf16.mxu0 %v6524_v9 }
 0x2d2   :  { %4622 = vmatpush1.bf16.msra.mxu0 %v6522_v10 }
 0x2d3   :  { %4623 = vmatprep.subr.bf16.mxu0 %v6527_v11 }
 0x2d6   :  { %4624 = vmatpush1.bf16.msra.mxu0 %v6525_v12 }
 0x2d7   :  { %4625 = vmatprep.subr.bf16.mxu0 %v6530_v13 }
 0x2da   :  { %4626 = vmatpush1.bf16.msra.mxu0 %v6528_v14 }
 0x2db   :  { %4627 = vmatprep.subr.bf16.mxu0 %v6533_v4 }
 0x2de   :  { %4628 = vmatpush1.bf16.msra.mxu0 %v6531_v7 }
 0x2df   :  { %4629 = vmatprep.subr.bf16.mxu0 %v6536_v15 }
 0x2e2   :  { %4630 = vmatpush1.bf16.msra.mxu0 %v6534_v47  ;;  %v5545_v51 = vpop.f32.mrb[16].mxu1 }
 0x2e3   :  { %v5546_v17 = vpop.f32.mrb[17].mxu1  ;;  %4631 = vmatprep.subr.bf16.mxu0 %v6539_v50  ;;  %v4909_v50 = vld [vmem:[#allocation11 + $0x8] ss:$12 sps:$4 sm:$0xff]  }
 0x2e4   :  { %v5547_v20 = vadd.f32 %v5546_v17, %v5545_v51  ;;  %v5548_v57 = vpop.f32.mrb[18].mxu1 }
 0x2e5   :  { %v5549_v21 = vpop.f32.mrb[19].mxu1 }
 0x2e6   :  { %4632 = vmatpush1.bf16.msra.mxu0 %v6537_v63  ;;  %v5550_v22 = vadd.f32 %v5549_v21, %v5548_v57  ;;  %v4697_v49 = vadd.f32 %v5547_v20, %v2864_v39 }
 0x2e7   :  { %4633 = vmatprep.subr.bf16.mxu0 %v6542_v19  ;;  %v4914_v19 = vunpack.c.l.bf16 %v4909_v50 }
 0x2e8   :  { %v4700_v54 = vadd.f32 %v5550_v22, %v2864_v39 }
 0x2ea   :  { %4634 = vmatpush1.bf16.msra.mxu0 %v6540_v23  ;;  %v4917_v23 = vunpack.c.h.bf16 %v4909_v50 }
 0x2eb   :  { %4635 = vmatprep.subr.bf16.mxu0 %v6545_v24 }
 0x2ee   :  { %4636 = vmatpush1.bf16.msra.mxu0 %v6543_v25 }
 0x2ef   :  { %4637 = vmatprep.subr.bf16.mxu0 %v6548_v26 }
 0x2f2   :  { %4638 = vmatpush1.bf16.msra.mxu0 %v6546_v27  ;;  %v4908_v27 = vld [vmem:[#allocation11] sm:$0xff] }
 0x2f3   :  { %4639 = vmatprep.subr.bf16.mxu0 %v6551_v29  ;;  %v2856_v29 = vrot.slane %v6976_v37, %v6903_v44 }
 0x2f6   :  { %4640 = vmatpush1.bf16.msra.mxu0 %v6549_v30  ;;  %v2860_v30 = vrot.slane %v6976_v37, %v6906_v6 }
 0x2f7   :  { %4641 = vmatprep.subr.bf16.mxu0 %v6554_v31  ;;  %v4910_v31 = vld [vmem:[#allocation11 + $0xc] sm:$0xff] }
 0x2fa   :  { %4642 = vmatpush1.bf16.msra.mxu0 %v6552_v32  ;;  %v4912_v32 = vunpack.c.l.bf16 %v4908_v27 }
 0x2fb   :  { %4643 = vmatprep.subr.bf16.mxu0 %v6557_v33 }
 0x2fe   :  { %4644 = vmatpush1.bf16.msra.mxu0 %v6555_v35  ;;  %v4913_v35 = vunpack.c.h.bf16 %v4908_v27 }
 0x2ff   :  { %4645 = vmatprep.subr.bf16.mxu0 %v6560_v36 }
 0x302   :  { %4646 = vmatpush1.bf16.msra.mxu0 %v6558_v28  ;;  %v5567_v41 = vpop.f32.mrb[20].mxu1 }
 0x303   :  { %v5568_v18 = vpop.f32.mrb[21].mxu1  ;;  %4647 = vmatprep.subr.bf16.mxu0 %v6563_v38  ;;  %v4915_v38 = vunpack.c.l.bf16 %v4910_v31 }
 0x304   :  { %v5569_v52 = vadd.f32 %v5568_v18, %v5567_v41  ;;  %v5570_v48 = vpop.f32.mrb[22].mxu1 }
 0x305   :  { %v5571_v53 = vpop.f32.mrb[23].mxu1 }
 0x306   :  { %v4738_v55 = vadd.f32 %v5569_v52, %v4697_v49  ;;  %4648 = vmatpush1.bf16.msra.mxu0 %v6561_v45  ;;  %v5572_v56 = vadd.f32 %v5571_v53, %v5570_v48  ;;  %v4916_v45 = vunpack.c.h.bf16 %v4910_v31 }
 0x307   :  { %4649 = vmatprep.subr.bf16.mxu0 %v6566_v46 }
 0x308   :  { %v4741_v59 = vadd.f32 %v5572_v56, %v4700_v54 }
 0x30a   :  { %4650 = vmatpush1.bf16.msra.mxu0 %v6564_v58 }
 0x30d   :  { %4652 = vmatmul.mubr.bf16.vlgmr.msra.gmra.mrb[8].mxu0 %v6972_v16 }
 0x322   :  { %v5589_v42 = vpop.f32.mrb[24].mxu1 }
 0x323   :  { %v5590_v60 = vpop.f32.mrb[25].mxu1 }
 0x324   :  { %v5591_v61 = vadd.f32 %v5590_v60, %v5589_v42  ;;  %v5592_v62 = vpop.f32.mrb[26].mxu1 }
 0x325   :  { %v5593_v0 = vpop.f32.mrb[27].mxu1 }
 0x326   :  { %v4779_v1 = vadd.f32 %v5591_v61, %v4738_v55  ;;  %v5594_v2 = vadd.f32 %v5593_v0, %v5592_v62 }
 0x328   :  { %v4782_v3 = vadd.f32 %v5594_v2, %v4741_v59 }
 0x342   :  { %v5611_v43 = vpop.f32.mrb[28].mxu1 }
 0x343   :  { %v5612_v40 = vpop.f32.mrb[29].mxu1 }
 0x344   :  { %v5613_v34 = vadd.f32 %v5612_v40, %v5611_v43  ;;  %v5614_v5 = vpop.f32.mrb[30].mxu1 }
 0x345   :  { %v5615_v8 = vpop.f32.mrb[31].mxu1 }
 0x346   :  { %v4820_v9 = vadd.f32 %v5613_v34, %v4779_v1  ;;  %v5616_v10 = vadd.f32 %v5615_v8, %v5614_v5 }
 0x348   :  { %v4823_v11 = vadd.f32 %v5616_v10, %v4782_v3 }
 0x362   :  { %v5633_v12 = vpop.f32.mrb[32].mxu1 }
 0x363   :  { %v5634_v13 = vpop.f32.mrb[33].mxu1 }
 0x364   :  { %v5635_v14 = vadd.f32 %v5634_v13, %v5633_v12  ;;  %v5636_v16 = vpop.f32.mrb[34].mxu1 }
 0x365   :  { %v5637_v4 = vpop.f32.mrb[35].mxu1 }
 0x366   :  { %v4861_v7 = vadd.f32 %v5635_v14, %v4820_v9  ;;  %v5638_v15 = vadd.f32 %v5637_v4, %v5636_v16 }
 0x368   :  { %v4864_v47 = vadd.f32 %v5638_v15, %v4823_v11 }
 0x3a0   :  { %v5655_v51 = vpop.f32.mrb[36].mxu1 }
 0x3a1   :  { %v5656_v63 = vpop.f32.mrb[37].mxu1 }
 0x3a2   :  { %v5657_v17 = vadd.f32 %v5656_v63, %v5655_v51  ;;  %v5658_v20 = vpop.f32.mrb[38].mxu1 }
 0x3a3   :  { %v5659_v57 = vpop.f32.mrb[39].mxu1 }
 0x3a4   :  { %v4902_v21 = vadd.f32 %v5657_v17, %v4861_v7  ;;  %v5660_v22 = vadd.f32 %v5659_v57, %v5658_v20 }
 0x3a6   :  { %v4920_v24 = vmul.f32 %v4914_v19, %v4902_v21  ;;  %v4905_v25 = vadd.f32 %v5660_v22, %v4864_v47 }
 0x3a8   :  { %4926 = vst [vmem:[#allocation13 + $0x10] sm:$0xff] %v4920_v24  ;;  %v4923_v26 = vmul.f32 %v4917_v23, %v4905_v25 }
 0x3aa   :  { %4929 = vst [vmem:[#allocation13 + $0x28] sm:$0xff] %v4923_v26 }
 0x3e0   :  { %v4653_v33 = vpop.f32.mrb[8].mxu0 }
 0x3e1   :  { %v5685_v36 = vadd.f32 %v4653_v33, %v2856_v29  ;;  %v4655_v28 = vpop.f32.mrb[9].mxu0 }
 0x3e2   :  { %v5686_v39 = vadd.f32 %v4655_v28, %v2860_v30  ;;  %v4657_v41 = vpop.f32.mrb[10].mxu0 }
 0x3e3   :  { %v4918_v18 = vmul.f32 %v5685_v36, %v4912_v32  ;;  %v5687_v46 = vadd.f32 %v4657_v41, %v2856_v29  ;;  %v4659_v49 = vpop.f32.mrb[11].mxu0 }
 0x3e4   :  { %v4919_v52 = vmul.f32 %v5686_v39, %v4913_v35  ;;  %v5688_v44 = vadd.f32 %v4659_v49, %v2860_v30 }
 0x3e5   :  { %4924 = vst [vmem:[#allocation13] sm:$0xff] %v4918_v18  ;;  %v4921_v48 = vmul.f32 %v5687_v46, %v4915_v38 }
 0x3e6   :  { %4925 = vst [vmem:[#allocation13 + $0x8] sm:$0xff] %v4919_v52  ;;  %v4922_v6 = vmul.f32 %v5688_v44, %v4916_v45 }
 0x3e7   :  { %4927 = vst [vmem:[#allocation13 + $0x18] sm:$0xff] %v4921_v48 }
 0x3e8   :  { %4928 = vst [vmem:[#allocation13 + $0x20] sm:$0xff] %v4922_v6 }
 0x3e9   :  { %6714 = shalt.err (!%p6711_p10)
}
 0x3ea   :  { %s6715_s14 = scalar_lea.hbm %s7003_s6, 768 }
 0x3eb   :  { %p6716_p11 = scmp.ne.s32.totalorder %s7003_s6, %s6715_s14  ;;  %p6719_p12 = scmp.lt.u32.totalorder %s6715_s14, %s7003_s6 }
 0x3ed   :  { %p6721_p13 = pnand %p6719_p12, %p6716_p11 }
 0x3ef   :  { %6724 = shalt.err (!%p6721_p13)
}
 0x3f0   :  { %s6747_s28 = smov 384   ;;  %s6748_s29 = smov 24  }
 0x3f1   :  { %4941 = dma.vmem_to_hbm [thread:$0]  %s4936_s22, 768, %s7003_s6, [#allocation4], %s6747_s28, %s6747_s28, %s6748_s29  }
 0x3f2   :  { %6733 = dma.done.wait [#allocation4], 768  }
 0x3f3   :  { %6734 = vsyncadd [#allocation4], 4294966528 }
 0x3f4   :  { %4945 = vsyncpa [#allocation3], 1 }
 0x3f5   :  { %4946 = vsyncpa [#allocation6], 1 }
 0x3f6   :  { %4947 = vsyncpa [#allocation9], 1 }
 0x3f7   :  { %4948 = vsyncpa [#allocation12], 1 }
 0x3f8   :  { %4949 = vsyncpa [#allocation4], 1 }

</bundles_post_ra>
